<compile_context>
chip_gen: v6e
topology: v6e:2x2x1
jax: 0.10.0
libtpu: 0.0.40
codegen_flags: <defaults>
</compile_context>

<pallas_src>
import functools

import jax
import jax.numpy as jnp
from jax import lax
from jax.experimental import pallas as pl
from jax.experimental.pallas import tpu as pltpu

# ---- Path A: one-hot matmul, full table resident in VMEM -------------------
ONEHOT_TOK_BLOCK = 512                     # tokens per grid step (MXU friendly)
ONEHOT_MAX_VOCAB = 4096                    # keeps (T, V) one-hot <= 8 MiB f32
ONEHOT_MAX_TABLE_BYTES = 8 * 1024 * 1024   # full-table-in-VMEM budget guard

# ---- Path B: HBM row-gather via manual DMA ----------------------------------
GATHER_TOK_BLOCK = 256                     # rows DMA'd per grid step
N_INFLIGHT = 8                             # row DMAs kept in flight (pow2)


# =============================================================================
# Path A: one-hot matmul kernel (table resident in VMEM)
# =============================================================================
def _embed_onehot_kernel(ids_ref, w_ref, o_ref):
    # ids_ref: VMEM (TOK_BLOCK, 1) int32
    # w_ref:   VMEM (vocab_size, word_dim)  -- grid-invariant, resident
    # o_ref:   VMEM (TOK_BLOCK, word_dim)
    ids = ids_ref[...]                                        # (T, 1)
    vocab_size = w_ref.shape[0]
    col = lax.broadcasted_iota(jnp.int32, (ids.shape[0], vocab_size), 1)
    one_hot = (ids == col).astype(w_ref.dtype)                # (T, V)
    o_ref[...] = jnp.dot(
        one_hot, w_ref[...], preferred_element_type=jnp.float32
    ).astype(o_ref.dtype)


def _make_weight_spec(vocab_size, word_dim, single_buffer):
    if single_buffer:
        # Grid-invariant block: one VMEM copy is enough.
        return pl.BlockSpec((vocab_size, word_dim), lambda i: (0, 0),
                            pipeline_mode=pl.Buffered(1))
    return pl.BlockSpec((vocab_size, word_dim), lambda i: (0, 0))


@functools.partial(jax.jit, static_argnames=("single_buffer_weight",))
def _forward_onehot(ids, weight, *, single_buffer_weight):
    B, S = ids.shape
    vocab_size, word_dim = weight.shape
    N = B * S
    n_blocks = pl.cdiv(N, ONEHOT_TOK_BLOCK)
    N_pad = n_blocks * ONEHOT_TOK_BLOCK

    ids_flat = ids.reshape(N).astype(jnp.int32)
    if N_pad != N:
        ids_flat = jnp.pad(ids_flat, (0, N_pad - N))          # pad with valid id 0
    ids_col = ids_flat.reshape(N_pad, 1)

    dtype_bytes = jnp.dtype(weight.dtype).itemsize
    table_bytes = vocab_size * word_dim * dtype_bytes
    out_tile_bytes = ONEHOT_TOK_BLOCK * word_dim * dtype_bytes
    onehot_bytes = ONEHOT_TOK_BLOCK * vocab_size * 4
    vmem_limit = int(max(
        16 * 2**20,
        (1 if single_buffer_weight else 2) * table_bytes
        + 2 * out_tile_bytes + onehot_bytes + 2 * 2**20))

    cost = pl.CostEstimate(
        flops=int(2 * N_pad * vocab_size * word_dim),
        transcendentals=0,
        bytes_accessed=int(N_pad * 4 + table_bytes
                           + N_pad * word_dim * dtype_bytes))

    out_flat = pl.pallas_call(
        _embed_onehot_kernel,
        out_shape=jax.ShapeDtypeStruct((N_pad, word_dim), weight.dtype),
        grid_spec=pltpu.PrefetchScalarGridSpec(
            num_scalar_prefetch=0,
            grid=(n_blocks,),
            in_specs=[
                pl.BlockSpec((ONEHOT_TOK_BLOCK, 1), lambda i: (i, 0)),
                _make_weight_spec(vocab_size, word_dim, single_buffer_weight),
            ],
            out_specs=pl.BlockSpec((ONEHOT_TOK_BLOCK, word_dim),
                                   lambda i: (i, 0)),
        ),
        compiler_params=pltpu.CompilerParams(
            dimension_semantics=("parallel",),
            vmem_limit_bytes=vmem_limit,
        ),
        cost_estimate=cost,
    )(ids_col, weight)

    return out_flat[:N].reshape(B, S, word_dim)


# =============================================================================
# Path B: HBM row-gather kernel (weight stays in HBM, per-row DMAs)
# =============================================================================
def _embed_gather_kernel(ids_ref, w_hbm, o_ref, copy_sems):
    # ids_ref:   SMEM (N_pad,) int32 (scalar prefetch)
    # w_hbm:     HBM  (vocab_size, word_dim) -- raw ref, manual DMA
    # o_ref:     VMEM (GATHER_TOK_BLOCK, word_dim) output tile
    # copy_sems: DMA semaphores (N_INFLIGHT,)
    base = pl.program_id(0) * GATHER_TOK_BLOCK

    def start_row(t):
        row = ids_ref[base + t]
        pltpu.make_async_copy(
            w_hbm.at[pl.ds(row, 1), :],
            o_ref.at[pl.ds(t, 1), :],
            copy_sems.at[t & (N_INFLIGHT - 1)],
        ).start()

    def wait_row(t):
        # Only the transfer size + semaphore matter for the wait descriptor.
        pltpu.make_async_copy(
            w_hbm.at[pl.ds(0, 1), :],
            o_ref.at[pl.ds(0, 1), :],
            copy_sems.at[t & (N_INFLIGHT - 1)],
        ).wait()

    # Prime the pipeline with N_INFLIGHT row copies.
    @pl.loop(0, N_INFLIGHT)
    def _(t):
        start_row(t)

    # Wait one, start the next, keeping N_INFLIGHT DMAs in flight.
    @pl.loop(0, GATHER_TOK_BLOCK)
    def _(t):
        wait_row(t)

        @pl.when(t + N_INFLIGHT < GATHER_TOK_BLOCK)
        def _():
            start_row(t + N_INFLIGHT)


@jax.jit
def _forward_gather(ids, weight):
    B, S = ids.shape
    vocab_size, word_dim = weight.shape
    N = B * S
    n_blocks = pl.cdiv(N, GATHER_TOK_BLOCK)
    N_pad = n_blocks * GATHER_TOK_BLOCK

    ids_flat = ids.reshape(N).astype(jnp.int32)
    if N_pad != N:
        ids_flat = jnp.pad(ids_flat, (0, N_pad - N))          # pad with valid id 0

    dtype_bytes = jnp.dtype(weight.dtype).itemsize
    cost = pl.CostEstimate(
        flops=0,
        transcendentals=0,
        bytes_accessed=int(N_pad * 4 + 2 * N_pad * word_dim * dtype_bytes))

    out_flat = pl.pallas_call(
        _embed_gather_kernel,
        out_shape=jax.ShapeDtypeStruct((N_pad, word_dim), weight.dtype),
        grid_spec=pltpu.PrefetchScalarGridSpec(
            num_scalar_prefetch=1,
            grid=(n_blocks,),
            in_specs=[pl.BlockSpec(memory_space=pl.ANY)],     # weight in HBM
            out_specs=pl.BlockSpec((GATHER_TOK_BLOCK, word_dim),
                                   lambda i, ids_smem: (i, 0)),
            scratch_shapes=[pltpu.SemaphoreType.DMA((N_INFLIGHT,))],
        ),
        compiler_params=pltpu.CompilerParams(
            dimension_semantics=("arbitrary",),
        ),
        cost_estimate=cost,
    )(ids_flat, weight)

    return out_flat[:N].reshape(B, S, word_dim)


# =============================================================================
# Public wrapper + init
# =============================================================================
def cpu_vocab_embed_forward(ids, weight, method="auto"):
    """ids: (B, S) integer token ids; weight: (vocab_size, word_dim).
    Returns (B, S, word_dim) with out[b, s] = weight[ids[b, s]]."""
    vocab_size, word_dim = weight.shape
    table_bytes = vocab_size * word_dim * jnp.dtype(weight.dtype).itemsize

    if method == "auto":
        small = (table_bytes <= ONEHOT_MAX_TABLE_BYTES
                 and vocab_size <= ONEHOT_MAX_VOCAB)
        method = "onehot" if small else "gather"

    if method == "onehot":
        try:
            return _forward_onehot(ids, weight, single_buffer_weight=True)
        except Exception:
            # This Pallas build rejected pipeline_mode=pl.Buffered(1) on the
            # top-level pipeline; fall back to the default double-buffered spec.
            return _forward_onehot(ids, weight, single_buffer_weight=False)
    elif method == "gather":
        return _forward_gather(ids, weight)
    raise ValueError(f"unknown method: {method!r}")


def init_cpu_vocab_embed(key, vocab_size, word_dim, padding_idx=None,
                         dtype=jnp.float32):
    """Matches CPUVocabEmbed.reset_parameters(): weight ~ N(0, 1), padding row
    zeroed.  (Kernels also support bf16 weights; matmul accumulates in f32.)"""
    weight = jax.random.normal(key, (vocab_size, word_dim), dtype=jnp.float32)
    if padding_idx is not None:
        if padding_idx < 0:
            padding_idx = vocab_size + padding_idx
        weight = weight.at[padding_idx].set(0.0)
    return weight.astype(dtype)


if __name__ == "__main__":
    padding_idx = 0
    B, S = 2, 8

    key = jax.random.PRNGKey(0)
    k_w1, k_ids1, k_w2, k_ids2 = jax.random.split(key, 4)

    # ---- Test 1: small vocab -> resident one-hot MXU path ------------------
    vocab_size, word_dim = 64, 128
    weight = init_cpu_vocab_embed(k_w1, vocab_size, word_dim, padding_idx)
    ids = jax.random.randint(k_ids1, (B, S), 0, vocab_size, dtype=jnp.int32)
    ids = ids.at[0, 0].set(padding_idx)   # make sure padding index appears

    out = cpu_vocab_embed_forward(ids, weight, method="onehot")
    out = jax.block_until_ready(out)
    ref = jnp.take(weight, ids, axis=0)
    assert out.shape == (B, S, word_dim)
    assert jnp.allclose(out, ref), "onehot path mismatch vs reference"
    assert jnp.all(out[0, 0] == 0.0), "padding row should be zero"

    # ---- Test 2: HBM row-gather DMA path (used for large vocabularies) -----
    vocab_size2, word_dim2 = 512, 128
    weight2 = init_cpu_vocab_embed(k_w2, vocab_size2, word_dim2, padding_idx)
    ids2 = jax.random.randint(k_ids2, (B, S), 0, vocab_size2, dtype=jnp.int32)
    ids2 = ids2.at[0, 0].set(padding_idx)

    out2 = cpu_vocab_embed_forward(ids2, weight2, method="gather")
    out2 = jax.block_until_ready(out2)
    ref2 = jnp.take(weight2, ids2, axis=0)
    assert out2.shape == (B, S, word_dim2)
    assert jnp.allclose(out2, ref2), "gather path mismatch vs reference"
    assert jnp.all(out2[0, 0] == 0.0), "padding row should be zero"

    print("KERNEL_OK")
</pallas_src>

<mosaic_0001>
module attributes {stable_mosaic.version = 11 : i64} {
  func.func @_embed_onehot_kernel(%arg0: i32, %arg1: memref<512x1xi32, #tpu.memory_space<vmem>>, %arg2: memref<64x128xf32, #tpu.memory_space<vmem>>, %arg3: memref<512x128xf32, #tpu.memory_space<vmem>>) attributes {dimension_semantics = [#tpu.dimension_semantics<parallel>], iteration_bounds = array<i64: 1>, scalar_prefetch = 0 : i64, scratch_operands = 0 : i64, tpu.core_type = #tpu.core_type<tc>, window_params = [{transform_indices = @transform_0, window_bounds = array<i64: 512, 1>}, {pipeline_mode = #tpu.pipeline_mode<synchronous>, transform_indices = @transform_1, window_bounds = array<i64: 64, 128>}, {transform_indices = @transform_2, window_bounds = array<i64: 512, 128>}]} {
    %c0 = arith.constant 0 : index
    %c0_0 = arith.constant 0 : index
    %0 = vector.load %arg1[%c0, %c0_0] : memref<512x1xi32, #tpu.memory_space<vmem>>, vector<512x1xi32>
    %1 = tpu.iota {dimensions = array<i32: 1>} : vector<512x64xi32>
    %2 = vector.broadcast %0 : vector<512x1xi32> to vector<512x64xi32>
    %3 = arith.cmpi eq, %2, %1 : vector<512x64xi32>
    %4 = arith.extui %3 : vector<512x64xi1> to vector<512x64xi32>
    %5 = arith.sitofp %4 : vector<512x64xi32> to vector<512x64xf32>
    %c0_1 = arith.constant 0 : index
    %c0_2 = arith.constant 0 : index
    %6 = vector.load %arg2[%c0_1, %c0_2] : memref<64x128xf32, #tpu.memory_space<vmem>>, vector<64x128xf32>
    %cst = arith.constant dense<0.000000e+00> : vector<512x128xf32>
    %7 = tpu.matmul %5, %6, %cst {dimension_numbers = #tpu.dot_dimension_numbers<[1], [0], [0], [1], [0, 0, 1, 1], [], []>} : vector<512x64xf32>, vector<64x128xf32>, vector<512x128xf32> -> vector<512x128xf32>
    %c0_3 = arith.constant 0 : index
    %c0_4 = arith.constant 0 : index
    %8 = vector.load %arg3[%c0_3, %c0_4] : memref<512x128xf32, #tpu.memory_space<vmem>>, vector<512x128xf32>
    tpu.vector_store %arg3[%c0_3, %c0_4], %7 {strides = array<i32>} : memref<512x128xf32, #tpu.memory_space<vmem>>, vector<512x128xf32>,
    return
  }
  func.func @transform_0(%arg0: i32) -> (i32, i32) {
    %c0_i32 = arith.constant 0 : i32
    %c0_i32_0 = arith.constant 0 : i32
    return %arg0, %c0_i32 : i32, i32
  }
  func.func @transform_1(%arg0: i32) -> (i32, i32) {
    %c0_i32 = arith.constant 0 : i32
    %c0_i32_0 = arith.constant 0 : i32
    %c0_i32_1 = arith.constant 0 : i32
    return %c0_i32, %c0_i32_0 : i32, i32
  }
  func.func @transform_2(%arg0: i32) -> (i32, i32) {
    %c0_i32 = arith.constant 0 : i32
    %c0_i32_0 = arith.constant 0 : i32
    return %arg0, %c0_i32 : i32, i32
  }
}

module attributes {stable_mosaic.version = 11 : i64} {
  func.func @_embed_onehot_kernel(%arg0: i32, %arg1: memref<512x1xi32, #tpu.memory_space<vmem>>, %arg2: memref<64x128xf32, #tpu.memory_space<vmem>>, %arg3: memref<512x128xf32, #tpu.memory_space<vmem>>) attributes {dimension_semantics = [#tpu.dimension_semantics<parallel>], iteration_bounds = array<i64: 1>, scalar_prefetch = 0 : i64, scratch_operands = 0 : i64, tpu.core_type = #tpu.core_type<tc>, window_params = [{transform_indices = @transform_0, window_bounds = array<i64: 512, 1>}, {pipeline_mode = #tpu.pipeline_mode<synchronous>, transform_indices = @transform_1, window_bounds = array<i64: 64, 128>}, {transform_indices = @transform_2, window_bounds = array<i64: 512, 128>}]} {
    %c0 = arith.constant 0 : index
    %c0_0 = arith.constant 0 : index
    %0 = vector.load %arg1[%c0, %c0_0] : memref<512x1xi32, #tpu.memory_space<vmem>>, vector<512x1xi32>
    %1 = tpu.iota {dimensions = array<i32: 1>} : vector<512x64xi32>
    %2 = vector.broadcast %0 : vector<512x1xi32> to vector<512x64xi32>
    %3 = arith.cmpi eq, %2, %1 : vector<512x64xi32>
    %4 = arith.extui %3 : vector<512x64xi1> to vector<512x64xi32>
    %5 = arith.sitofp %4 : vector<512x64xi32> to vector<512x64xf32>
    %c0_1 = arith.constant 0 : index
    %c0_2 = arith.constant 0 : index
    %6 = vector.load %arg2[%c0_1, %c0_2] : memref<64x128xf32, #tpu.memory_space<vmem>>, vector<64x128xf32>
    %cst = arith.constant dense<0.000000e+00> : vector<512x128xf32>
    %7 = tpu.matmul %5, %6, %cst {dimension_numbers = #tpu.dot_dimension_numbers<[1], [0], [0], [1], [0, 0, 1, 1], [], []>} : vector<512x64xf32>, vector<64x128xf32>, vector<512x128xf32> -> vector<512x128xf32>
    %c0_3 = arith.constant 0 : index
    %c0_4 = arith.constant 0 : index
    %8 = vector.load %arg3[%c0_3, %c0_4] : memref<512x128xf32, #tpu.memory_space<vmem>>, vector<512x128xf32>
    tpu.vector_store %arg3[%c0_3, %c0_4], %7 {strides = array<i32>} : memref<512x128xf32, #tpu.memory_space<vmem>>, vector<512x128xf32>,
    return
  }
  func.func @transform_0(%arg0: i32) -> (i32, i32) {
    %c0_i32 = arith.constant 0 : i32
    %c0_i32_0 = arith.constant 0 : i32
    return %arg0, %c0_i32 : i32, i32
  }
  func.func @transform_1(%arg0: i32) -> (i32, i32) {
    %c0_i32 = arith.constant 0 : i32
    %c0_i32_0 = arith.constant 0 : i32
    %c0_i32_1 = arith.constant 0 : i32
    return %c0_i32, %c0_i32_0 : i32, i32
  }
  func.func @transform_2(%arg0: i32) -> (i32, i32) {
    %c0_i32 = arith.constant 0 : i32
    %c0_i32_0 = arith.constant 0 : i32
    return %arg0, %c0_i32 : i32, i32
  }
}

</mosaic_0001>

<bundles_post_ra>
// kernel: _forward_onehot.1
= control target key start
LH: loop header
LB: loop body
LE: loop exit
PB: predicated region body
PF: predicated region fallthrough
CT: control target
= control target key end

     0   :  { %v1447_v0 = vmov 0   ;;  %vm469_vm0 = vcmask 523264   ;;  %s2066_s0 = inlined_call_operand.vmem [shape: s32[512,1], index: 0, kind: input, shape index: {}]   ;;  %s2067_s1 = inlined_call_operand.vmem [shape: f32[64,128], index: 1, kind: input, shape index: {}]   ;;  %s2068_s2 = inlined_call_operand.vmem [shape: f32[512,128], index: 2, kind: output, shape index: {}]  }
   0x1   :  { %1446 = vset.pattern.permute.xlu1 %v1447_v0  ;;  %1445 = vset.pattern.permute.xlu0 %v1447_v0  ;;  %v12_v1 = vld [vmem:[%s2066_s0 + $0x8] sm:$0xff]  ;;  %v11_v2 = vld [vmem:[%s2066_s0] sm:$0xff]  ;;  %v45_v5 = vld [vmem:[%s2066_s0 + $0x110] sm:$0xff] }
   0x2   :  { %81 = vperm.xlu1 %1446, %v12_v1   ;;  %78 = vperm.xlu0 %1445, %v11_v2   ;;  %v44_v3 = vld [vmem:[%s2066_s0 + $0x108] sm:$0xff]  ;;  %v43_v4 = vld [vmem:[%s2066_s0 + $0x100] sm:$0xff]  ;;  %v13_v6 = vld [vmem:[%s2066_s0 + $0x10] sm:$0xff] }
   0x3   :  { %v46_v7 = vld [vmem:[%s2066_s0 + $0x118] sm:$0xff]  ;;  %v47_v9 = vld [vmem:[%s2066_s0 + $0x120] sm:$0xff]  ;;  %v48_v11 = vld [vmem:[%s2066_s0 + $0x128] sm:$0xff] }
   0x4   :  { %v14_v8 = vld [vmem:[%s2066_s0 + $0x18] sm:$0xff]  ;;  %v15_v10 = vld [vmem:[%s2066_s0 + $0x20] sm:$0xff]  ;;  %v16_v12 = vld [vmem:[%s2066_s0 + $0x28] sm:$0xff] }
   0x5   :  { %v468_v13 = vld [vmem:[%s2067_s1 + $0x38] sm:$0xff]  ;;  %v467_v14 = vld [vmem:[%s2067_s1 + $0x30] sm:$0xff]  ;;  %v466_v15 = vld [vmem:[%s2067_s1 + $0x28] sm:$0xff] }
   0x6   :  { %177 = vperm.xlu1 %1446, %v44_v3   ;;  %174 = vperm.xlu0 %1445, %v43_v4   ;;  %v49_v16 = vld [vmem:[%s2066_s0 + $0x130] sm:$0xff]  ;;  %v465_v18 = vld [vmem:[%s2067_s1 + $0x20] sm:$0xff]  ;;  %v50_v19 = vld [vmem:[%s2066_s0 + $0x138] sm:$0xff] }
   0x7   :  { %1315 = vmatprep.subr.mxu0 %v468_v13  ;;  %1427 = vmatprep.subr.mxu1 %v468_v13  ;;  %v17_v17 = vld [vmem:[%s2066_s0 + $0x30] sm:$0xff]  ;;  %v18_v20 = vld [vmem:[%s2066_s0 + $0x38] sm:$0xff]  ;;  %v51_v23 = vld [vmem:[%s2066_s0 + $0x140] sm:$0xff] }
   0x8   :  { %1316 = vmatpush3.msra.mxu0 %v468_v13  ;;  %1435 = vmatpush3.msra.mxu1 %v468_v13  ;;  %v464_v21 = vld [vmem:[%s2067_s1 + $0x18] sm:$0xff]  ;;  %v463_v22 = vld [vmem:[%s2067_s1 + $0x10] sm:$0xff]  ;;  %v19_v24 = vld [vmem:[%s2066_s0 + $0x40] sm:$0xff]  ;;  %v1448_v13 = vmov 0.0  }
   0x9   :  { %1317 = vmatprep.subr.mxu0 %v467_v14  ;;  %1428 = vmatprep.subr.mxu1 %v467_v14  ;;  %v462_v25 = vld [vmem:[%s2067_s1 + $0x8] sm:$0xff]  ;;  %v461_v28 = vld [vmem:[%s2067_s1] sm:$0xff]  ;;  %v53_v29 = vld [vmem:[%s2066_s0 + $0x150] sm:$0xff] }
   0xa   :  { %180 = vperm.xlu1 %1446, %v45_v5   ;;  %84 = vperm.xlu0 %1445, %v13_v6   ;;  %v52_v26 = vld [vmem:[%s2066_s0 + $0x148] sm:$0xff]  ;;  %v21_v30 = vld [vmem:[%s2066_s0 + $0x50] sm:$0xff]  ;;  %v54_v31 = vld [vmem:[%s2066_s0 + $0x158] sm:$0xff]  ;;  %v75_v5 = vlaneseq }
   0xb   :  { %1318 = vmatpush3.msra.mxu0 %v467_v14  ;;  %1436 = vmatpush3.msra.mxu1 %v467_v14  ;;  %v20_v27 = vld [vmem:[%s2066_s0 + $0x48] sm:$0xff]  ;;  %v22_v32 = vld [vmem:[%s2066_s0 + $0x58] sm:$0xff]  ;;  %v55_v33 = vld [vmem:[%s2066_s0 + $0x160] sm:$0xff] }
   0xc   :  { %1319 = vmatprep.subr.mxu0 %v466_v15  ;;  %1429 = vmatprep.subr.mxu1 %v466_v15  ;;  %v23_v34 = vld [vmem:[%s2066_s0 + $0x60] sm:$0xff]  ;;  %v56_v35 = vld [vmem:[%s2066_s0 + $0x168] sm:$0xff]  ;;  %v57_v37 = vld [vmem:[%s2066_s0 + $0x170] sm:$0xff] }
   0xd   :  { %1320 = vmatpush3.msra.mxu0 %v466_v15  ;;  %1437 = vmatpush3.msra.mxu1 %v466_v15  ;;  %v24_v36 = vld [vmem:[%s2066_s0 + $0x68] sm:$0xff]  ;;  %v25_v38 = vld [vmem:[%s2066_s0 + $0x70] sm:$0xff]  ;;  %v58_v39 = vld [vmem:[%s2066_s0 + $0x178] sm:$0xff] }
   0xe   :  { %183 = vperm.xlu1 %1446, %v46_v7   ;;  %87 = vperm.xlu0 %1445, %v14_v8   ;;  %v26_v40 = vld [vmem:[%s2066_s0 + $0x78] sm:$0xff]  ;;  %v59_v41 = vld [vmem:[%s2066_s0 + $0x180] sm:$0xff]  ;;  %v60_v43 = vld [vmem:[%s2066_s0 + $0x188] sm:$0xff]  ;;  %v1674_v8 = vand.u32 127, %v75_v5 }
   0xf   :  { %1321 = vmatprep.subr.mxu0 %v465_v18  ;;  %1430 = vmatprep.subr.mxu1 %v465_v18  ;;  %v27_v42 = vld [vmem:[%s2066_s0 + $0x80] sm:$0xff]  ;;  %v28_v44 = vld [vmem:[%s2066_s0 + $0x88] sm:$0xff]  ;;  %v61_v45 = vld [vmem:[%s2066_s0 + $0x190] sm:$0xff] }
  0x10   :  { %1322 = vmatpush3.msra.mxu0 %v465_v18  ;;  %1438 = vmatpush3.msra.mxu1 %v465_v18  ;;  %v29_v46 = vld [vmem:[%s2066_s0 + $0x90] sm:$0xff]  ;;  %v62_v47 = vld [vmem:[%s2066_s0 + $0x198] sm:$0xff]  ;;  %v63_v49 = vld [vmem:[%s2066_s0 + $0x1a0] sm:$0xff] }
  0x11   :  { %1323 = vmatprep.subr.mxu0 %v464_v21  ;;  %1431 = vmatprep.subr.mxu1 %v464_v21  ;;  %v30_v48 = vld [vmem:[%s2066_s0 + $0x98] sm:$0xff]  ;;  %v31_v50 = vld [vmem:[%s2066_s0 + $0xa0] sm:$0xff]  ;;  %v64_v51 = vld [vmem:[%s2066_s0 + $0x1a8] sm:$0xff] }
  0x12   :  { %186 = vperm.xlu1 %1446, %v47_v9   ;;  %90 = vperm.xlu0 %1445, %v15_v10   ;;  %v32_v52 = vld [vmem:[%s2066_s0 + $0xa8] sm:$0xff]  ;;  %v65_v53 = vld [vmem:[%s2066_s0 + $0x1b0] sm:$0xff]  ;;  %v66_v55 = vld [vmem:[%s2066_s0 + $0x1b8] sm:$0xff] }
  0x13   :  { %1324 = vmatpush3.msra.mxu0 %v464_v21  ;;  %1439 = vmatpush3.msra.mxu1 %v464_v21  ;;  %v33_v54 = vld [vmem:[%s2066_s0 + $0xb0] sm:$0xff]  ;;  %v34_v56 = vld [vmem:[%s2066_s0 + $0xb8] sm:$0xff]  ;;  %v67_v57 = vld [vmem:[%s2066_s0 + $0x1c0] sm:$0xff] }
  0x14   :  { %1325 = vmatprep.subr.mxu0 %v463_v22  ;;  %1432 = vmatprep.subr.mxu1 %v463_v22  ;;  %v35_v58 = vld [vmem:[%s2066_s0 + $0xc0] sm:$0xff]  ;;  %v68_v59 = vld [vmem:[%s2066_s0 + $0x1c8] sm:$0xff]  ;;  %v69_v61 = vld [vmem:[%s2066_s0 + $0x1d0] sm:$0xff] }
  0x15   :  { %1326 = vmatpush3.msra.mxu0 %v463_v22  ;;  %1440 = vmatpush3.msra.mxu1 %v463_v22  ;;  %v36_v60 = vld [vmem:[%s2066_s0 + $0xc8] sm:$0xff]  ;;  %v37_v62 = vld [vmem:[%s2066_s0 + $0xd0] sm:$0xff]  ;;  %v70_v63 = vld [vmem:[%s2066_s0 + $0x1d8] sm:$0xff] }
  0x16   :  { %189 = vperm.xlu1 %1446, %v48_v11   ;;  %93 = vperm.xlu0 %1445, %v16_v12   ;;  %v38_v0 = vld [vmem:[%s2066_s0 + $0xd8] sm:$0xff]  ;;  %v71_v1 = vld [vmem:[%s2066_s0 + $0x1e0] sm:$0xff]  ;;  %v72_v3 = vld [vmem:[%s2066_s0 + $0x1e8] sm:$0xff] }
  0x17   :  { %1327 = vmatprep.subr.mxu0 %v462_v25  ;;  %1433 = vmatprep.subr.mxu1 %v462_v25  ;;  %v39_v2 = vld [vmem:[%s2066_s0 + $0xe0] sm:$0xff]  ;;  %v40_v4 = vld [vmem:[%s2066_s0 + $0xe8] sm:$0xff]  ;;  %v73_v6 = vld [vmem:[%s2066_s0 + $0x1f0] sm:$0xff] }
  0x18   :  { %1328 = vmatpush3.msra.mxu0 %v462_v25  ;;  %1441 = vmatpush3.msra.mxu1 %v462_v25  ;;  %v41_v7 = vld [vmem:[%s2066_s0 + $0xf0] sm:$0xff]  ;;  %v74_v9 = vld [vmem:[%s2066_s0 + $0x1f8] sm:$0xff] }
  0x19   :  { %1329 = vmatprep.subr.mxu0 %v461_v28  ;;  %1434 = vmatprep.subr.mxu1 %v461_v28  ;;  %v42_v10 = vld [vmem:[%s2066_s0 + $0xf8] sm:$0xff] }
  0x1a   :  { %192 = vperm.xlu1 %1446, %v49_v16   ;;  %96 = vperm.xlu0 %1445, %v17_v17  }
  0x1b   :  { %1330 = vmatpush3.msra.mxu0 %v461_v28  ;;  %1442 = vmatpush3.msra.mxu1 %v461_v28 }
  0x1e   :  { %195 = vperm.xlu1 %1446, %v50_v19   ;;  %99 = vperm.xlu0 %1445, %v18_v20  }
  0x22   :  { %198 = vperm.xlu1 %1446, %v51_v23   ;;  %102 = vperm.xlu0 %1445, %v19_v24  }
  0x26   :  { %201 = vperm.xlu1 %1446, %v52_v26   ;;  %105 = vperm.xlu0 %1445, %v20_v27  }
  0x2a   :  { %204 = vperm.xlu1 %1446, %v53_v29   ;;  %108 = vperm.xlu0 %1445, %v21_v30  }
  0x2e   :  { %207 = vperm.xlu1 %1446, %v54_v31   ;;  %111 = vperm.xlu0 %1445, %v22_v32  }
  0x32   :  { %210 = vperm.xlu1 %1446, %v55_v33   ;;  %114 = vperm.xlu0 %1445, %v23_v34  }
  0x36   :  { %213 = vperm.xlu1 %1446, %v56_v35   ;;  %117 = vperm.xlu0 %1445, %v24_v36  }
  0x3a   :  { %216 = vperm.xlu1 %1446, %v57_v37   ;;  %120 = vperm.xlu0 %1445, %v25_v38  }
  0x3e   :  { %219 = vperm.xlu1 %1446, %v58_v39   ;;  %123 = vperm.xlu0 %1445, %v26_v40  }
  0x42   :  { %222 = vperm.xlu1 %1446, %v59_v41   ;;  %126 = vperm.xlu0 %1445, %v27_v42  }
  0x46   :  { %225 = vperm.xlu1 %1446, %v60_v43   ;;  %129 = vperm.xlu0 %1445, %v28_v44  }
  0x4a   :  { %228 = vperm.xlu1 %1446, %v61_v45   ;;  %132 = vperm.xlu0 %1445, %v29_v46  }
  0x4e   :  { %231 = vperm.xlu1 %1446, %v62_v47   ;;  %135 = vperm.xlu0 %1445, %v30_v48  }
  0x52   :  { %234 = vperm.xlu1 %1446, %v63_v49   ;;  %138 = vperm.xlu0 %1445, %v31_v50  }
  0x56   :  { %237 = vperm.xlu1 %1446, %v64_v51   ;;  %141 = vperm.xlu0 %1445, %v32_v52  }
  0x5a   :  { %240 = vperm.xlu1 %1446, %v65_v53   ;;  %144 = vperm.xlu0 %1445, %v33_v54  }
  0x5e   :  { %243 = vperm.xlu1 %1446, %v66_v55   ;;  %147 = vperm.xlu0 %1445, %v34_v56  }
  0x62   :  { %246 = vperm.xlu1 %1446, %v67_v57   ;;  %150 = vperm.xlu0 %1445, %v35_v58  }
  0x66   :  { %249 = vperm.xlu1 %1446, %v68_v59   ;;  %153 = vperm.xlu0 %1445, %v36_v60  }
  0x6a   :  { %252 = vperm.xlu1 %1446, %v69_v61   ;;  %156 = vperm.xlu0 %1445, %v37_v62  }
  0x6e   :  { %255 = vperm.xlu1 %1446, %v70_v63   ;;  %159 = vperm.xlu0 %1445, %v38_v0  }
  0x72   :  { %258 = vperm.xlu1 %1446, %v71_v1   ;;  %162 = vperm.xlu0 %1445, %v39_v2  }
  0x76   :  { %261 = vperm.xlu1 %1446, %v72_v3   ;;  %165 = vperm.xlu0 %1445, %v40_v4  }
  0x7a   :  { %264 = vperm.xlu1 %1446, %v73_v6   ;;  %168 = vperm.xlu0 %1445, %v41_v7  }
  0x7d   :  { %v82_v11 = vpop.permute.xlu1 %81  ;;  %v79_v12 = vpop.permute.xlu0 %78 }
  0x7e   :  { %vm270_vm1 = vcmp.eq.s32.totalorder %v82_v11, %v1674_v8  ;;  %vm269_vm2 = vcmp.eq.s32.totalorder %v79_v12, %v1674_v8  ;;  %267 = vperm.xlu1 %1446, %v74_v9   ;;  %171 = vperm.xlu0 %1445, %v42_v10  }
  0x7f   :  { %v1116_v14 = vsel %vm270_vm1, 1.0, %v1448_v13  ;;  %v1115_v15 = vsel %vm269_vm2, 1.0, %v1448_v13 }
  0x80   :  { %1331 = vmatprep.mubr.msk.f32.mxu0 %vm469_vm0, %v1115_v15 }
  0x81   :  { %v178_v16 = vpop.permute.xlu1 %177  ;;  %1332 = vmatmul.mubr.msk.f32.vlgmr.msra.gmra.mxu0 %vm469_vm0, %v1116_v14  ;;  %v175_v17 = vpop.permute.xlu0 %174 }
  0x82   :  { %vm302_vm3 = vcmp.eq.s32.totalorder %v178_v16, %v1674_v8  ;;  %vm301_vm4 = vcmp.eq.s32.totalorder %v175_v17, %v1674_v8 }
  0x83   :  { %v1148_v18 = vsel %vm302_vm3, 1.0, %v1448_v13  ;;  %v1147_v19 = vsel %vm301_vm4, 1.0, %v1448_v13 }
  0x84   :  { %1379 = vmatprep.mubr.msk.f32.mxu1 %vm469_vm0, %v1147_v19 }
  0x85   :  { %v181_v20 = vpop.permute.xlu1 %180  ;;  %1380 = vmatmul.mubr.msk.f32.vlgmr.msra.gmra.mxu1 %vm469_vm0, %v1148_v18  ;;  %v85_v21 = vpop.permute.xlu0 %84 }
  0x86   :  { %vm303_vm5 = vcmp.eq.s32.totalorder %v181_v20, %v1674_v8  ;;  %vm271_vm6 = vcmp.eq.s32.totalorder %v85_v21, %v1674_v8 }
  0x87   :  { %v1149_v22 = vsel %vm303_vm5, 1.0, %v1448_v13  ;;  %v1117_v23 = vsel %vm271_vm6, 1.0, %v1448_v13 }
  0x88   :  { %1334 = vmatprep.mubr.msk.f32.mxu0 %vm469_vm0, %v1117_v23  ;;  %1382 = vmatprep.mubr.msk.f32.mxu1 %vm469_vm0, %v1149_v22 }
  0x89   :  { %v184_v24 = vpop.permute.xlu1 %183  ;;  %v88_v25 = vpop.permute.xlu0 %87 }
  0x8a   :  { %vm304_vm7 = vcmp.eq.s32.totalorder %v184_v24, %v1674_v8  ;;  %vm272_vm8 = vcmp.eq.s32.totalorder %v88_v25, %v1674_v8 }
  0x8b   :  { %v1150_v26 = vsel %vm304_vm7, 1.0, %v1448_v13  ;;  %v1118_v27 = vsel %vm272_vm8, 1.0, %v1448_v13 }
  0x8c   :  { %1335 = vmatmul.mubr.msk.f32.gmra.mxu0 %vm469_vm0, %v1118_v27  ;;  %1383 = vmatmul.mubr.msk.f32.gmra.mxu1 %vm469_vm0, %v1150_v26 }
  0x8d   :  { %v187_v28 = vpop.permute.xlu1 %186  ;;  %v91_v29 = vpop.permute.xlu0 %90 }
  0x8e   :  { %vm305_vm9 = vcmp.eq.s32.totalorder %v187_v28, %v1674_v8  ;;  %vm273_vm10 = vcmp.eq.s32.totalorder %v91_v29, %v1674_v8 }
  0x8f   :  { %v1151_v30 = vsel %vm305_vm9, 1.0, %v1448_v13  ;;  %v1119_v31 = vsel %vm273_vm10, 1.0, %v1448_v13 }
  0x90   :  { %1337 = vmatprep.mubr.msk.f32.mxu0 %vm469_vm0, %v1119_v31  ;;  %1385 = vmatprep.mubr.msk.f32.mxu1 %vm469_vm0, %v1151_v30 }
  0x91   :  { %v190_v32 = vpop.permute.xlu1 %189  ;;  %v94_v33 = vpop.permute.xlu0 %93 }
  0x92   :  { %vm306_vm11 = vcmp.eq.s32.totalorder %v190_v32, %v1674_v8  ;;  %vm274_vm12 = vcmp.eq.s32.totalorder %v94_v33, %v1674_v8 }
  0x93   :  { %v1152_v34 = vsel %vm306_vm11, 1.0, %v1448_v13  ;;  %v1120_v35 = vsel %vm274_vm12, 1.0, %v1448_v13 }
  0x94   :  { %1338 = vmatmul.mubr.msk.f32.gmra.mxu0 %vm469_vm0, %v1120_v35  ;;  %1386 = vmatmul.mubr.msk.f32.gmra.mxu1 %vm469_vm0, %v1152_v34 }
  0x95   :  { %v193_v36 = vpop.permute.xlu1 %192  ;;  %v97_v37 = vpop.permute.xlu0 %96 }
  0x96   :  { %vm307_vm13 = vcmp.eq.s32.totalorder %v193_v36, %v1674_v8  ;;  %vm275_vm14 = vcmp.eq.s32.totalorder %v97_v37, %v1674_v8 }
  0x97   :  { %v1153_v38 = vsel %vm307_vm13, 1.0, %v1448_v13  ;;  %v1121_v39 = vsel %vm275_vm14, 1.0, %v1448_v13 }
  0x98   :  { %1340 = vmatprep.mubr.msk.f32.mxu0 %vm469_vm0, %v1121_v39  ;;  %1388 = vmatprep.mubr.msk.f32.mxu1 %vm469_vm0, %v1153_v38 }
  0x99   :  { %v196_v40 = vpop.permute.xlu1 %195  ;;  %v100_v41 = vpop.permute.xlu0 %99 }
  0x9a   :  { %vm308_vm15 = vcmp.eq.s32.totalorder %v196_v40, %v1674_v8  ;;  %vm276_vm1 = vcmp.eq.s32.totalorder %v100_v41, %v1674_v8 }
  0x9b   :  { %v1154_v42 = vsel %vm308_vm15, 1.0, %v1448_v13  ;;  %v1122_v43 = vsel %vm276_vm1, 1.0, %v1448_v13 }
  0x9c   :  { %1341 = vmatmul.mubr.msk.f32.gmra.mxu0 %vm469_vm0, %v1122_v43  ;;  %1389 = vmatmul.mubr.msk.f32.gmra.mxu1 %vm469_vm0, %v1154_v42 }
  0x9d   :  { %v199_v44 = vpop.permute.xlu1 %198  ;;  %v103_v45 = vpop.permute.xlu0 %102 }
  0x9e   :  { %vm309_vm2 = vcmp.eq.s32.totalorder %v199_v44, %v1674_v8  ;;  %vm277_vm3 = vcmp.eq.s32.totalorder %v103_v45, %v1674_v8 }
  0x9f   :  { %v1155_v46 = vsel %vm309_vm2, 1.0, %v1448_v13  ;;  %v1123_v47 = vsel %vm277_vm3, 1.0, %v1448_v13 }
  0xa0   :  { %1343 = vmatprep.mubr.msk.f32.mxu0 %vm469_vm0, %v1123_v47  ;;  %1391 = vmatprep.mubr.msk.f32.mxu1 %vm469_vm0, %v1155_v46 }
  0xa1   :  { %v202_v48 = vpop.permute.xlu1 %201  ;;  %v106_v49 = vpop.permute.xlu0 %105 }
  0xa2   :  { %vm310_vm4 = vcmp.eq.s32.totalorder %v202_v48, %v1674_v8  ;;  %vm278_vm5 = vcmp.eq.s32.totalorder %v106_v49, %v1674_v8 }
  0xa3   :  { %v1156_v50 = vsel %vm310_vm4, 1.0, %v1448_v13  ;;  %v1124_v51 = vsel %vm278_vm5, 1.0, %v1448_v13 }
  0xa4   :  { %1344 = vmatmul.mubr.msk.f32.gmra.mxu0 %vm469_vm0, %v1124_v51  ;;  %1392 = vmatmul.mubr.msk.f32.gmra.mxu1 %vm469_vm0, %v1156_v50 }
  0xa5   :  { %v205_v52 = vpop.permute.xlu1 %204  ;;  %v109_v53 = vpop.permute.xlu0 %108 }
  0xa6   :  { %vm311_vm6 = vcmp.eq.s32.totalorder %v205_v52, %v1674_v8  ;;  %vm279_vm7 = vcmp.eq.s32.totalorder %v109_v53, %v1674_v8 }
  0xa7   :  { %v1157_v54 = vsel %vm311_vm6, 1.0, %v1448_v13  ;;  %v1125_v55 = vsel %vm279_vm7, 1.0, %v1448_v13 }
  0xa8   :  { %1346 = vmatprep.mubr.msk.f32.mxu0 %vm469_vm0, %v1125_v55  ;;  %1394 = vmatprep.mubr.msk.f32.mxu1 %vm469_vm0, %v1157_v54 }
  0xa9   :  { %v208_v56 = vpop.permute.xlu1 %207  ;;  %v112_v57 = vpop.permute.xlu0 %111 }
  0xaa   :  { %vm312_vm8 = vcmp.eq.s32.totalorder %v208_v56, %v1674_v8  ;;  %vm280_vm9 = vcmp.eq.s32.totalorder %v112_v57, %v1674_v8 }
  0xab   :  { %v1158_v58 = vsel %vm312_vm8, 1.0, %v1448_v13  ;;  %v1126_v59 = vsel %vm280_vm9, 1.0, %v1448_v13 }
  0xac   :  { %1347 = vmatmul.mubr.msk.f32.gmra.mxu0 %vm469_vm0, %v1126_v59  ;;  %1395 = vmatmul.mubr.msk.f32.gmra.mxu1 %vm469_vm0, %v1158_v58 }
  0xad   :  { %v211_v60 = vpop.permute.xlu1 %210  ;;  %v115_v61 = vpop.permute.xlu0 %114 }
  0xae   :  { %vm313_vm10 = vcmp.eq.s32.totalorder %v211_v60, %v1674_v8  ;;  %vm281_vm11 = vcmp.eq.s32.totalorder %v115_v61, %v1674_v8 }
  0xaf   :  { %v1159_v62 = vsel %vm313_vm10, 1.0, %v1448_v13  ;;  %v1127_v63 = vsel %vm281_vm11, 1.0, %v1448_v13 }
  0xb0   :  { %1349 = vmatprep.mubr.msk.f32.mxu0 %vm469_vm0, %v1127_v63  ;;  %1397 = vmatprep.mubr.msk.f32.mxu1 %vm469_vm0, %v1159_v62 }
  0xb1   :  { %v214_v0 = vpop.permute.xlu1 %213  ;;  %v118_v1 = vpop.permute.xlu0 %117 }
  0xb2   :  { %vm314_vm12 = vcmp.eq.s32.totalorder %v214_v0, %v1674_v8  ;;  %vm282_vm13 = vcmp.eq.s32.totalorder %v118_v1, %v1674_v8 }
  0xb3   :  { %v1160_v2 = vsel %vm314_vm12, 1.0, %v1448_v13  ;;  %v1128_v3 = vsel %vm282_vm13, 1.0, %v1448_v13 }
  0xb4   :  { %1350 = vmatmul.mubr.msk.f32.gmra.mxu0 %vm469_vm0, %v1128_v3  ;;  %1398 = vmatmul.mubr.msk.f32.gmra.mxu1 %vm469_vm0, %v1160_v2 }
  0xb5   :  { %v217_v4 = vpop.permute.xlu1 %216  ;;  %v121_v5 = vpop.permute.xlu0 %120 }
  0xb6   :  { %vm315_vm14 = vcmp.eq.s32.totalorder %v217_v4, %v1674_v8  ;;  %vm283_vm15 = vcmp.eq.s32.totalorder %v121_v5, %v1674_v8 }
  0xb7   :  { %v1161_v6 = vsel %vm315_vm14, 1.0, %v1448_v13  ;;  %v1129_v7 = vsel %vm283_vm15, 1.0, %v1448_v13 }
  0xb8   :  { %1352 = vmatprep.mubr.msk.f32.mxu0 %vm469_vm0, %v1129_v7  ;;  %1400 = vmatprep.mubr.msk.f32.mxu1 %vm469_vm0, %v1161_v6 }
  0xb9   :  { %v220_v9 = vpop.permute.xlu1 %219  ;;  %v124_v10 = vpop.permute.xlu0 %123 }
  0xba   :  { %vm316_vm1 = vcmp.eq.s32.totalorder %v220_v9, %v1674_v8  ;;  %vm284_vm2 = vcmp.eq.s32.totalorder %v124_v10, %v1674_v8 }
  0xbb   :  { %v1162_v11 = vsel %vm316_vm1, 1.0, %v1448_v13  ;;  %v1130_v12 = vsel %vm284_vm2, 1.0, %v1448_v13 }
  0xbc   :  { %1353 = vmatmul.mubr.msk.f32.gmra.mxu0 %vm469_vm0, %v1130_v12  ;;  %1401 = vmatmul.mubr.msk.f32.gmra.mxu1 %vm469_vm0, %v1162_v11 }
  0xbd   :  { %v223_v14 = vpop.permute.xlu1 %222  ;;  %v127_v15 = vpop.permute.xlu0 %126 }
  0xbe   :  { %vm317_vm3 = vcmp.eq.s32.totalorder %v223_v14, %v1674_v8  ;;  %vm285_vm4 = vcmp.eq.s32.totalorder %v127_v15, %v1674_v8 }
  0xbf   :  { %v1163_v16 = vsel %vm317_vm3, 1.0, %v1448_v13  ;;  %v1131_v17 = vsel %vm285_vm4, 1.0, %v1448_v13 }
  0xc0   :  { %1355 = vmatprep.mubr.msk.f32.mxu0 %vm469_vm0, %v1131_v17  ;;  %1403 = vmatprep.mubr.msk.f32.mxu1 %vm469_vm0, %v1163_v16 }
  0xc1   :  { %v226_v18 = vpop.permute.xlu1 %225  ;;  %v130_v19 = vpop.permute.xlu0 %129 }
  0xc2   :  { %vm318_vm5 = vcmp.eq.s32.totalorder %v226_v18, %v1674_v8  ;;  %vm286_vm6 = vcmp.eq.s32.totalorder %v130_v19, %v1674_v8 }
  0xc3   :  { %v1164_v20 = vsel %vm318_vm5, 1.0, %v1448_v13  ;;  %v1132_v21 = vsel %vm286_vm6, 1.0, %v1448_v13 }
  0xc4   :  { %1356 = vmatmul.mubr.msk.f32.gmra.mxu0 %vm469_vm0, %v1132_v21  ;;  %1404 = vmatmul.mubr.msk.f32.gmra.mxu1 %vm469_vm0, %v1164_v20 }
  0xc5   :  { %v229_v22 = vpop.permute.xlu1 %228  ;;  %v133_v23 = vpop.permute.xlu0 %132 }
  0xc6   :  { %vm319_vm7 = vcmp.eq.s32.totalorder %v229_v22, %v1674_v8  ;;  %vm287_vm8 = vcmp.eq.s32.totalorder %v133_v23, %v1674_v8 }
  0xc7   :  { %v1165_v24 = vsel %vm319_vm7, 1.0, %v1448_v13  ;;  %v1133_v25 = vsel %vm287_vm8, 1.0, %v1448_v13 }
  0xc8   :  { %1358 = vmatprep.mubr.msk.f32.mxu0 %vm469_vm0, %v1133_v25  ;;  %1406 = vmatprep.mubr.msk.f32.mxu1 %vm469_vm0, %v1165_v24 }
  0xc9   :  { %v232_v26 = vpop.permute.xlu1 %231  ;;  %v136_v27 = vpop.permute.xlu0 %135 }
  0xca   :  { %vm320_vm9 = vcmp.eq.s32.totalorder %v232_v26, %v1674_v8  ;;  %vm288_vm10 = vcmp.eq.s32.totalorder %v136_v27, %v1674_v8 }
  0xcb   :  { %v1166_v28 = vsel %vm320_vm9, 1.0, %v1448_v13  ;;  %v1134_v29 = vsel %vm288_vm10, 1.0, %v1448_v13 }
  0xcc   :  { %1359 = vmatmul.mubr.msk.f32.gmra.mxu0 %vm469_vm0, %v1134_v29  ;;  %1407 = vmatmul.mubr.msk.f32.gmra.mxu1 %vm469_vm0, %v1166_v28 }
  0xcd   :  { %v235_v30 = vpop.permute.xlu1 %234  ;;  %v139_v31 = vpop.permute.xlu0 %138 }
  0xce   :  { %vm321_vm11 = vcmp.eq.s32.totalorder %v235_v30, %v1674_v8  ;;  %vm289_vm12 = vcmp.eq.s32.totalorder %v139_v31, %v1674_v8 }
  0xcf   :  { %v1167_v32 = vsel %vm321_vm11, 1.0, %v1448_v13  ;;  %v1135_v33 = vsel %vm289_vm12, 1.0, %v1448_v13 }
  0xd0   :  { %1361 = vmatprep.mubr.msk.f32.mxu0 %vm469_vm0, %v1135_v33  ;;  %1409 = vmatprep.mubr.msk.f32.mxu1 %vm469_vm0, %v1167_v32 }
  0xd1   :  { %v238_v34 = vpop.permute.xlu1 %237  ;;  %v142_v35 = vpop.permute.xlu0 %141 }
  0xd2   :  { %vm322_vm13 = vcmp.eq.s32.totalorder %v238_v34, %v1674_v8  ;;  %vm290_vm14 = vcmp.eq.s32.totalorder %v142_v35, %v1674_v8 }
  0xd3   :  { %v1168_v36 = vsel %vm322_vm13, 1.0, %v1448_v13  ;;  %v1136_v37 = vsel %vm290_vm14, 1.0, %v1448_v13 }
  0xd4   :  { %1362 = vmatmul.mubr.msk.f32.gmra.mxu0 %vm469_vm0, %v1136_v37  ;;  %1410 = vmatmul.mubr.msk.f32.gmra.mxu1 %vm469_vm0, %v1168_v36 }
  0xd5   :  { %v241_v38 = vpop.permute.xlu1 %240  ;;  %v145_v39 = vpop.permute.xlu0 %144 }
  0xd6   :  { %vm323_vm15 = vcmp.eq.s32.totalorder %v241_v38, %v1674_v8  ;;  %vm291_vm1 = vcmp.eq.s32.totalorder %v145_v39, %v1674_v8 }
  0xd7   :  { %v1169_v40 = vsel %vm323_vm15, 1.0, %v1448_v13  ;;  %v1137_v41 = vsel %vm291_vm1, 1.0, %v1448_v13 }
  0xd8   :  { %1364 = vmatprep.mubr.msk.f32.mxu0 %vm469_vm0, %v1137_v41  ;;  %1412 = vmatprep.mubr.msk.f32.mxu1 %vm469_vm0, %v1169_v40 }
  0xd9   :  { %v244_v42 = vpop.permute.xlu1 %243  ;;  %v148_v43 = vpop.permute.xlu0 %147 }
  0xda   :  { %vm324_vm2 = vcmp.eq.s32.totalorder %v244_v42, %v1674_v8  ;;  %vm292_vm3 = vcmp.eq.s32.totalorder %v148_v43, %v1674_v8 }
  0xdb   :  { %v1170_v44 = vsel %vm324_vm2, 1.0, %v1448_v13  ;;  %v1138_v45 = vsel %vm292_vm3, 1.0, %v1448_v13 }
  0xdc   :  { %1365 = vmatmul.mubr.msk.f32.gmra.mxu0 %vm469_vm0, %v1138_v45  ;;  %1413 = vmatmul.mubr.msk.f32.gmra.mxu1 %vm469_vm0, %v1170_v44 }
  0xdd   :  { %v247_v46 = vpop.permute.xlu1 %246  ;;  %v151_v47 = vpop.permute.xlu0 %150 }
  0xde   :  { %vm325_vm4 = vcmp.eq.s32.totalorder %v247_v46, %v1674_v8  ;;  %vm293_vm5 = vcmp.eq.s32.totalorder %v151_v47, %v1674_v8 }
  0xdf   :  { %v1171_v48 = vsel %vm325_vm4, 1.0, %v1448_v13  ;;  %v1139_v49 = vsel %vm293_vm5, 1.0, %v1448_v13 }
  0xe0   :  { %1367 = vmatprep.mubr.msk.f32.mxu0 %vm469_vm0, %v1139_v49  ;;  %1415 = vmatprep.mubr.msk.f32.mxu1 %vm469_vm0, %v1171_v48 }
  0xe1   :  { %v250_v50 = vpop.permute.xlu1 %249  ;;  %v154_v51 = vpop.permute.xlu0 %153 }
  0xe2   :  { %vm326_vm6 = vcmp.eq.s32.totalorder %v250_v50, %v1674_v8  ;;  %vm294_vm7 = vcmp.eq.s32.totalorder %v154_v51, %v1674_v8 }
  0xe3   :  { %v1172_v52 = vsel %vm326_vm6, 1.0, %v1448_v13  ;;  %v1140_v53 = vsel %vm294_vm7, 1.0, %v1448_v13 }
  0xe4   :  { %1368 = vmatmul.mubr.msk.f32.gmra.mxu0 %vm469_vm0, %v1140_v53  ;;  %1416 = vmatmul.mubr.msk.f32.gmra.mxu1 %vm469_vm0, %v1172_v52 }
  0xe5   :  { %v253_v54 = vpop.permute.xlu1 %252  ;;  %v157_v55 = vpop.permute.xlu0 %156 }
  0xe6   :  { %vm327_vm8 = vcmp.eq.s32.totalorder %v253_v54, %v1674_v8  ;;  %vm295_vm9 = vcmp.eq.s32.totalorder %v157_v55, %v1674_v8 }
  0xe7   :  { %v1173_v56 = vsel %vm327_vm8, 1.0, %v1448_v13  ;;  %v1141_v57 = vsel %vm295_vm9, 1.0, %v1448_v13 }
  0xe8   :  { %1370 = vmatprep.mubr.msk.f32.mxu0 %vm469_vm0, %v1141_v57  ;;  %1418 = vmatprep.mubr.msk.f32.mxu1 %vm469_vm0, %v1173_v56 }
  0xe9   :  { %v256_v58 = vpop.permute.xlu1 %255  ;;  %v160_v59 = vpop.permute.xlu0 %159 }
  0xea   :  { %vm328_vm10 = vcmp.eq.s32.totalorder %v256_v58, %v1674_v8  ;;  %vm296_vm11 = vcmp.eq.s32.totalorder %v160_v59, %v1674_v8 }
  0xeb   :  { %v1174_v60 = vsel %vm328_vm10, 1.0, %v1448_v13  ;;  %v1142_v61 = vsel %vm296_vm11, 1.0, %v1448_v13 }
  0xec   :  { %1371 = vmatmul.mubr.msk.f32.gmra.mxu0 %vm469_vm0, %v1142_v61  ;;  %1419 = vmatmul.mubr.msk.f32.gmra.mxu1 %vm469_vm0, %v1174_v60 }
  0xed   :  { %v259_v62 = vpop.permute.xlu1 %258  ;;  %v163_v63 = vpop.permute.xlu0 %162 }
  0xee   :  { %vm329_vm12 = vcmp.eq.s32.totalorder %v259_v62, %v1674_v8  ;;  %vm297_vm13 = vcmp.eq.s32.totalorder %v163_v63, %v1674_v8 }
  0xef   :  { %v1175_v0 = vsel %vm329_vm12, 1.0, %v1448_v13  ;;  %v1143_v1 = vsel %vm297_vm13, 1.0, %v1448_v13 }
  0xf0   :  { %1373 = vmatprep.mubr.msk.f32.mxu0 %vm469_vm0, %v1143_v1  ;;  %1421 = vmatprep.mubr.msk.f32.mxu1 %vm469_vm0, %v1175_v0 }
  0xf1   :  { %v262_v2 = vpop.permute.xlu1 %261  ;;  %v166_v3 = vpop.permute.xlu0 %165 }
  0xf2   :  { %vm330_vm14 = vcmp.eq.s32.totalorder %v262_v2, %v1674_v8  ;;  %vm298_vm15 = vcmp.eq.s32.totalorder %v166_v3, %v1674_v8 }
  0xf3   :  { %v1176_v4 = vsel %vm330_vm14, 1.0, %v1448_v13  ;;  %v1144_v5 = vsel %vm298_vm15, 1.0, %v1448_v13 }
  0xf4   :  { %1374 = vmatmul.mubr.msk.f32.gmra.mxu0 %vm469_vm0, %v1144_v5  ;;  %1422 = vmatmul.mubr.msk.f32.gmra.mxu1 %vm469_vm0, %v1176_v4 }
  0xf5   :  { %v265_v6 = vpop.permute.xlu1 %264  ;;  %v169_v7 = vpop.permute.xlu0 %168 }
  0xf6   :  { %vm331_vm1 = vcmp.eq.s32.totalorder %v265_v6, %v1674_v8  ;;  %vm299_vm2 = vcmp.eq.s32.totalorder %v169_v7, %v1674_v8 }
  0xf7   :  { %v1177_v9 = vsel %vm331_vm1, 1.0, %v1448_v13  ;;  %v1145_v10 = vsel %vm299_vm2, 1.0, %v1448_v13 }
  0xf8   :  { %1376 = vmatprep.mubr.msk.f32.mxu0 %vm469_vm0, %v1145_v10  ;;  %1424 = vmatprep.mubr.msk.f32.mxu1 %vm469_vm0, %v1177_v9 }
  0xf9   :  { %v268_v11 = vpop.permute.xlu1 %267  ;;  %v172_v12 = vpop.permute.xlu0 %171 }
  0xfa   :  { %vm332_vm3 = vcmp.eq.s32.totalorder %v268_v11, %v1674_v8  ;;  %vm300_vm4 = vcmp.eq.s32.totalorder %v172_v12, %v1674_v8 }
  0xfb   :  { %v1178_v14 = vsel %vm332_vm3, 1.0, %v1448_v13  ;;  %v1146_v15 = vsel %vm300_vm4, 1.0, %v1448_v13 }
  0xfc   :  { %1377 = vmatmul.mubr.msk.f32.gmra.mxu0 %vm469_vm0, %v1146_v15  ;;  %1425 = vmatmul.mubr.msk.f32.gmra.mxu1 %vm469_vm0, %v1178_v14 }
 0x141   :  { %v1333_v16 = vpop.f32.mrf.mxu0 }
 0x142   :  { %1048 = vst [vmem:[%s2068_s2 + $0x8] sm:$0xff] %v1333_v16 }
 0x143   :  { %v728_v17 = vpop.f32.mrf.mxu0 }
 0x144   :  { %1047 = vst [vmem:[%s2068_s2] sm:$0xff] %v728_v17 }
 0x145   :  { %v1381_v18 = vpop.f32.mrf.mxu1 }
 0x146   :  { %1080 = vst [vmem:[%s2068_s2 + $0x108] sm:$0xff] %v1381_v18 }
 0x147   :  { %v888_v8 = vpop.f32.mrf.mxu1 }
 0x148   :  { %1079 = vst [vmem:[%s2068_s2 + $0x100] sm:$0xff] %v888_v8 }
 0x14c   :  { %v1336_v13 = vpop.f32.mrf.mxu0  ;;  %v1384_v19 = vpop.f32.mrf.mxu1 }
 0x14d   :  { %1050 = vst [vmem:[%s2068_s2 + $0x18] sm:$0xff] %v1336_v13  ;;  %1082 = vst [vmem:[%s2068_s2 + $0x118] sm:$0xff] %v1384_v19 }
 0x14e   :  { %v738_v20 = vpop.f32.mrf.mxu0  ;;  %v898_v21 = vpop.f32.mrf.mxu1 }
 0x14f   :  { %1049 = vst [vmem:[%s2068_s2 + $0x10] sm:$0xff] %v738_v20  ;;  %1081 = vst [vmem:[%s2068_s2 + $0x110] sm:$0xff] %v898_v21 }
 0x154   :  { %v1339_v22 = vpop.f32.mrf.mxu0  ;;  %v1387_v23 = vpop.f32.mrf.mxu1 }
 0x155   :  { %1052 = vst [vmem:[%s2068_s2 + $0x28] sm:$0xff] %v1339_v22  ;;  %1084 = vst [vmem:[%s2068_s2 + $0x128] sm:$0xff] %v1387_v23 }
 0x156   :  { %v748_v24 = vpop.f32.mrf.mxu0  ;;  %v908_v25 = vpop.f32.mrf.mxu1 }
 0x157   :  { %1051 = vst [vmem:[%s2068_s2 + $0x20] sm:$0xff] %v748_v24  ;;  %1083 = vst [vmem:[%s2068_s2 + $0x120] sm:$0xff] %v908_v25 }
 0x15c   :  { %v1342_v26 = vpop.f32.mrf.mxu0  ;;  %v1390_v27 = vpop.f32.mrf.mxu1 }
 0x15d   :  { %1054 = vst [vmem:[%s2068_s2 + $0x38] sm:$0xff] %v1342_v26  ;;  %1086 = vst [vmem:[%s2068_s2 + $0x138] sm:$0xff] %v1390_v27 }
 0x15e   :  { %v758_v28 = vpop.f32.mrf.mxu0  ;;  %v918_v29 = vpop.f32.mrf.mxu1 }
 0x15f   :  { %1053 = vst [vmem:[%s2068_s2 + $0x30] sm:$0xff] %v758_v28  ;;  %1085 = vst [vmem:[%s2068_s2 + $0x130] sm:$0xff] %v918_v29 }
 0x164   :  { %v1345_v30 = vpop.f32.mrf.mxu0  ;;  %v1393_v31 = vpop.f32.mrf.mxu1 }
 0x165   :  { %1056 = vst [vmem:[%s2068_s2 + $0x48] sm:$0xff] %v1345_v30  ;;  %1088 = vst [vmem:[%s2068_s2 + $0x148] sm:$0xff] %v1393_v31 }
 0x166   :  { %v768_v32 = vpop.f32.mrf.mxu0  ;;  %v928_v33 = vpop.f32.mrf.mxu1 }
 0x167   :  { %1055 = vst [vmem:[%s2068_s2 + $0x40] sm:$0xff] %v768_v32  ;;  %1087 = vst [vmem:[%s2068_s2 + $0x140] sm:$0xff] %v928_v33 }
 0x16c   :  { %v1348_v34 = vpop.f32.mrf.mxu0  ;;  %v1396_v35 = vpop.f32.mrf.mxu1 }
 0x16d   :  { %1058 = vst [vmem:[%s2068_s2 + $0x58] sm:$0xff] %v1348_v34  ;;  %1090 = vst [vmem:[%s2068_s2 + $0x158] sm:$0xff] %v1396_v35 }
 0x16e   :  { %v778_v36 = vpop.f32.mrf.mxu0  ;;  %v938_v37 = vpop.f32.mrf.mxu1 }
 0x16f   :  { %1057 = vst [vmem:[%s2068_s2 + $0x50] sm:$0xff] %v778_v36  ;;  %1089 = vst [vmem:[%s2068_s2 + $0x150] sm:$0xff] %v938_v37 }
 0x174   :  { %v1351_v38 = vpop.f32.mrf.mxu0  ;;  %v1399_v39 = vpop.f32.mrf.mxu1 }
 0x175   :  { %1060 = vst [vmem:[%s2068_s2 + $0x68] sm:$0xff] %v1351_v38  ;;  %1092 = vst [vmem:[%s2068_s2 + $0x168] sm:$0xff] %v1399_v39 }
 0x176   :  { %v788_v40 = vpop.f32.mrf.mxu0  ;;  %v948_v41 = vpop.f32.mrf.mxu1 }
 0x177   :  { %1059 = vst [vmem:[%s2068_s2 + $0x60] sm:$0xff] %v788_v40  ;;  %1091 = vst [vmem:[%s2068_s2 + $0x160] sm:$0xff] %v948_v41 }
 0x17c   :  { %v1354_v42 = vpop.f32.mrf.mxu0  ;;  %v1402_v43 = vpop.f32.mrf.mxu1 }
 0x17d   :  { %1062 = vst [vmem:[%s2068_s2 + $0x78] sm:$0xff] %v1354_v42  ;;  %1094 = vst [vmem:[%s2068_s2 + $0x178] sm:$0xff] %v1402_v43 }
 0x17e   :  { %v798_v44 = vpop.f32.mrf.mxu0  ;;  %v958_v45 = vpop.f32.mrf.mxu1 }
 0x17f   :  { %1061 = vst [vmem:[%s2068_s2 + $0x70] sm:$0xff] %v798_v44  ;;  %1093 = vst [vmem:[%s2068_s2 + $0x170] sm:$0xff] %v958_v45 }
 0x184   :  { %v1357_v46 = vpop.f32.mrf.mxu0  ;;  %v1405_v47 = vpop.f32.mrf.mxu1 }
 0x185   :  { %1064 = vst [vmem:[%s2068_s2 + $0x88] sm:$0xff] %v1357_v46  ;;  %1096 = vst [vmem:[%s2068_s2 + $0x188] sm:$0xff] %v1405_v47 }
 0x186   :  { %v808_v48 = vpop.f32.mrf.mxu0  ;;  %v968_v49 = vpop.f32.mrf.mxu1 }
 0x187   :  { %1063 = vst [vmem:[%s2068_s2 + $0x80] sm:$0xff] %v808_v48  ;;  %1095 = vst [vmem:[%s2068_s2 + $0x180] sm:$0xff] %v968_v49 }
 0x18c   :  { %v1360_v50 = vpop.f32.mrf.mxu0  ;;  %v1408_v51 = vpop.f32.mrf.mxu1 }
 0x18d   :  { %1066 = vst [vmem:[%s2068_s2 + $0x98] sm:$0xff] %v1360_v50  ;;  %1098 = vst [vmem:[%s2068_s2 + $0x198] sm:$0xff] %v1408_v51 }
 0x18e   :  { %v818_v52 = vpop.f32.mrf.mxu0  ;;  %v978_v53 = vpop.f32.mrf.mxu1 }
 0x18f   :  { %1065 = vst [vmem:[%s2068_s2 + $0x90] sm:$0xff] %v818_v52  ;;  %1097 = vst [vmem:[%s2068_s2 + $0x190] sm:$0xff] %v978_v53 }
 0x194   :  { %v1363_v54 = vpop.f32.mrf.mxu0  ;;  %v1411_v55 = vpop.f32.mrf.mxu1 }
 0x195   :  { %1068 = vst [vmem:[%s2068_s2 + $0xa8] sm:$0xff] %v1363_v54  ;;  %1100 = vst [vmem:[%s2068_s2 + $0x1a8] sm:$0xff] %v1411_v55 }
 0x196   :  { %v828_v56 = vpop.f32.mrf.mxu0  ;;  %v988_v57 = vpop.f32.mrf.mxu1 }
 0x197   :  { %1067 = vst [vmem:[%s2068_s2 + $0xa0] sm:$0xff] %v828_v56  ;;  %1099 = vst [vmem:[%s2068_s2 + $0x1a0] sm:$0xff] %v988_v57 }
 0x19c   :  { %v1366_v58 = vpop.f32.mrf.mxu0  ;;  %v1414_v59 = vpop.f32.mrf.mxu1 }
 0x19d   :  { %1070 = vst [vmem:[%s2068_s2 + $0xb8] sm:$0xff] %v1366_v58  ;;  %1102 = vst [vmem:[%s2068_s2 + $0x1b8] sm:$0xff] %v1414_v59 }
 0x19e   :  { %v838_v60 = vpop.f32.mrf.mxu0  ;;  %v998_v61 = vpop.f32.mrf.mxu1 }
 0x19f   :  { %1069 = vst [vmem:[%s2068_s2 + $0xb0] sm:$0xff] %v838_v60  ;;  %1101 = vst [vmem:[%s2068_s2 + $0x1b0] sm:$0xff] %v998_v61 }
 0x1a4   :  { %v1369_v62 = vpop.f32.mrf.mxu0  ;;  %v1417_v63 = vpop.f32.mrf.mxu1 }
 0x1a5   :  { %1072 = vst [vmem:[%s2068_s2 + $0xc8] sm:$0xff] %v1369_v62  ;;  %1104 = vst [vmem:[%s2068_s2 + $0x1c8] sm:$0xff] %v1417_v63 }
 0x1a6   :  { %v848_v0 = vpop.f32.mrf.mxu0  ;;  %v1008_v1 = vpop.f32.mrf.mxu1 }
 0x1a7   :  { %1071 = vst [vmem:[%s2068_s2 + $0xc0] sm:$0xff] %v848_v0  ;;  %1103 = vst [vmem:[%s2068_s2 + $0x1c0] sm:$0xff] %v1008_v1 }
 0x1ac   :  { %v1372_v2 = vpop.f32.mrf.mxu0  ;;  %v1420_v3 = vpop.f32.mrf.mxu1 }
 0x1ad   :  { %1074 = vst [vmem:[%s2068_s2 + $0xd8] sm:$0xff] %v1372_v2  ;;  %1106 = vst [vmem:[%s2068_s2 + $0x1d8] sm:$0xff] %v1420_v3 }
 0x1ae   :  { %v858_v4 = vpop.f32.mrf.mxu0  ;;  %v1018_v5 = vpop.f32.mrf.mxu1 }
 0x1af   :  { %1073 = vst [vmem:[%s2068_s2 + $0xd0] sm:$0xff] %v858_v4  ;;  %1105 = vst [vmem:[%s2068_s2 + $0x1d0] sm:$0xff] %v1018_v5 }
 0x1b4   :  { %v1375_v6 = vpop.f32.mrf.mxu0  ;;  %v1423_v7 = vpop.f32.mrf.mxu1 }
 0x1b5   :  { %1076 = vst [vmem:[%s2068_s2 + $0xe8] sm:$0xff] %v1375_v6  ;;  %1108 = vst [vmem:[%s2068_s2 + $0x1e8] sm:$0xff] %v1423_v7 }
 0x1b6   :  { %v868_v9 = vpop.f32.mrf.mxu0  ;;  %v1028_v10 = vpop.f32.mrf.mxu1 }
 0x1b7   :  { %1075 = vst [vmem:[%s2068_s2 + $0xe0] sm:$0xff] %v868_v9  ;;  %1107 = vst [vmem:[%s2068_s2 + $0x1e0] sm:$0xff] %v1028_v10 }
 0x1bc   :  { %v1378_v11 = vpop.f32.mrf.mxu0  ;;  %v1426_v12 = vpop.f32.mrf.mxu1 }
 0x1bd   :  { %1078 = vst [vmem:[%s2068_s2 + $0xf8] sm:$0xff] %v1378_v11  ;;  %1110 = vst [vmem:[%s2068_s2 + $0x1f8] sm:$0xff] %v1426_v12 }
 0x1be   :  { %v878_v14 = vpop.f32.mrf.mxu0  ;;  %v1038_v15 = vpop.f32.mrf.mxu1 }
 0x1bf   :  { %1077 = vst [vmem:[%s2068_s2 + $0xf0] sm:$0xff] %v878_v14  ;;  %1109 = vst [vmem:[%s2068_s2 + $0x1f0] sm:$0xff] %v1038_v15 }

// kernel: _forward_onehot.1
= control target key start
LH: loop header
LB: loop body
LE: loop exit
PB: predicated region body
PF: predicated region fallthrough
CT: control target
= control target key end

     0   :  { %v1447_v0 = vmov 0   ;;  %vm469_vm0 = vcmask 523264   ;;  %s2066_s0 = inlined_call_operand.vmem [shape: s32[512,1], index: 0, kind: input, shape index: {}]   ;;  %s2067_s1 = inlined_call_operand.vmem [shape: f32[64,128], index: 1, kind: input, shape index: {}]   ;;  %s2068_s2 = inlined_call_operand.vmem [shape: f32[512,128], index: 2, kind: output, shape index: {}]  }
   0x1   :  { %1446 = vset.pattern.permute.xlu1 %v1447_v0  ;;  %1445 = vset.pattern.permute.xlu0 %v1447_v0  ;;  %v12_v1 = vld [vmem:[%s2066_s0 + $0x8] sm:$0xff]  ;;  %v11_v2 = vld [vmem:[%s2066_s0] sm:$0xff]  ;;  %v45_v5 = vld [vmem:[%s2066_s0 + $0x110] sm:$0xff] }
   0x2   :  { %81 = vperm.xlu1 %1446, %v12_v1   ;;  %78 = vperm.xlu0 %1445, %v11_v2   ;;  %v44_v3 = vld [vmem:[%s2066_s0 + $0x108] sm:$0xff]  ;;  %v43_v4 = vld [vmem:[%s2066_s0 + $0x100] sm:$0xff]  ;;  %v13_v6 = vld [vmem:[%s2066_s0 + $0x10] sm:$0xff] }
   0x3   :  { %v46_v7 = vld [vmem:[%s2066_s0 + $0x118] sm:$0xff]  ;;  %v47_v9 = vld [vmem:[%s2066_s0 + $0x120] sm:$0xff]  ;;  %v48_v11 = vld [vmem:[%s2066_s0 + $0x128] sm:$0xff] }
   0x4   :  { %v14_v8 = vld [vmem:[%s2066_s0 + $0x18] sm:$0xff]  ;;  %v15_v10 = vld [vmem:[%s2066_s0 + $0x20] sm:$0xff]  ;;  %v16_v12 = vld [vmem:[%s2066_s0 + $0x28] sm:$0xff] }
   0x5   :  { %v468_v13 = vld [vmem:[%s2067_s1 + $0x38] sm:$0xff]  ;;  %v467_v14 = vld [vmem:[%s2067_s1 + $0x30] sm:$0xff]  ;;  %v466_v15 = vld [vmem:[%s2067_s1 + $0x28] sm:$0xff] }
   0x6   :  { %177 = vperm.xlu1 %1446, %v44_v3   ;;  %174 = vperm.xlu0 %1445, %v43_v4   ;;  %v49_v16 = vld [vmem:[%s2066_s0 + $0x130] sm:$0xff]  ;;  %v465_v18 = vld [vmem:[%s2067_s1 + $0x20] sm:$0xff]  ;;  %v50_v19 = vld [vmem:[%s2066_s0 + $0x138] sm:$0xff] }
   0x7   :  { %1315 = vmatprep.subr.mxu0 %v468_v13  ;;  %1427 = vmatprep.subr.mxu1 %v468_v13  ;;  %v17_v17 = vld [vmem:[%s2066_s0 + $0x30] sm:$0xff]  ;;  %v18_v20 = vld [vmem:[%s2066_s0 + $0x38] sm:$0xff]  ;;  %v51_v23 = vld [vmem:[%s2066_s0 + $0x140] sm:$0xff] }
   0x8   :  { %1316 = vmatpush3.msra.mxu0 %v468_v13  ;;  %1435 = vmatpush3.msra.mxu1 %v468_v13  ;;  %v464_v21 = vld [vmem:[%s2067_s1 + $0x18] sm:$0xff]  ;;  %v463_v22 = vld [vmem:[%s2067_s1 + $0x10] sm:$0xff]  ;;  %v19_v24 = vld [vmem:[%s2066_s0 + $0x40] sm:$0xff]  ;;  %v1448_v13 = vmov 0.0  }
   0x9   :  { %1317 = vmatprep.subr.mxu0 %v467_v14  ;;  %1428 = vmatprep.subr.mxu1 %v467_v14  ;;  %v462_v25 = vld [vmem:[%s2067_s1 + $0x8] sm:$0xff]  ;;  %v461_v28 = vld [vmem:[%s2067_s1] sm:$0xff]  ;;  %v53_v29 = vld [vmem:[%s2066_s0 + $0x150] sm:$0xff] }
   0xa   :  { %180 = vperm.xlu1 %1446, %v45_v5   ;;  %84 = vperm.xlu0 %1445, %v13_v6   ;;  %v52_v26 = vld [vmem:[%s2066_s0 + $0x148] sm:$0xff]  ;;  %v21_v30 = vld [vmem:[%s2066_s0 + $0x50] sm:$0xff]  ;;  %v54_v31 = vld [vmem:[%s2066_s0 + $0x158] sm:$0xff]  ;;  %v75_v5 = vlaneseq }
   0xb   :  { %1318 = vmatpush3.msra.mxu0 %v467_v14  ;;  %1436 = vmatpush3.msra.mxu1 %v467_v14  ;;  %v20_v27 = vld [vmem:[%s2066_s0 + $0x48] sm:$0xff]  ;;  %v22_v32 = vld [vmem:[%s2066_s0 + $0x58] sm:$0xff]  ;;  %v55_v33 = vld [vmem:[%s2066_s0 + $0x160] sm:$0xff] }
   0xc   :  { %1319 = vmatprep.subr.mxu0 %v466_v15  ;;  %1429 = vmatprep.subr.mxu1 %v466_v15  ;;  %v23_v34 = vld [vmem:[%s2066_s0 + $0x60] sm:$0xff]  ;;  %v56_v35 = vld [vmem:[%s2066_s0 + $0x168] sm:$0xff]  ;;  %v57_v37 = vld [vmem:[%s2066_s0 + $0x170] sm:$0xff] }
   0xd   :  { %1320 = vmatpush3.msra.mxu0 %v466_v15  ;;  %1437 = vmatpush3.msra.mxu1 %v466_v15  ;;  %v24_v36 = vld [vmem:[%s2066_s0 + $0x68] sm:$0xff]  ;;  %v25_v38 = vld [vmem:[%s2066_s0 + $0x70] sm:$0xff]  ;;  %v58_v39 = vld [vmem:[%s2066_s0 + $0x178] sm:$0xff] }
   0xe   :  { %183 = vperm.xlu1 %1446, %v46_v7   ;;  %87 = vperm.xlu0 %1445, %v14_v8   ;;  %v26_v40 = vld [vmem:[%s2066_s0 + $0x78] sm:$0xff]  ;;  %v59_v41 = vld [vmem:[%s2066_s0 + $0x180] sm:$0xff]  ;;  %v60_v43 = vld [vmem:[%s2066_s0 + $0x188] sm:$0xff]  ;;  %v1674_v8 = vand.u32 127, %v75_v5 }
   0xf   :  { %1321 = vmatprep.subr.mxu0 %v465_v18  ;;  %1430 = vmatprep.subr.mxu1 %v465_v18  ;;  %v27_v42 = vld [vmem:[%s2066_s0 + $0x80] sm:$0xff]  ;;  %v28_v44 = vld [vmem:[%s2066_s0 + $0x88] sm:$0xff]  ;;  %v61_v45 = vld [vmem:[%s2066_s0 + $0x190] sm:$0xff] }
  0x10   :  { %1322 = vmatpush3.msra.mxu0 %v465_v18  ;;  %1438 = vmatpush3.msra.mxu1 %v465_v18  ;;  %v29_v46 = vld [vmem:[%s2066_s0 + $0x90] sm:$0xff]  ;;  %v62_v47 = vld [vmem:[%s2066_s0 + $0x198] sm:$0xff]  ;;  %v63_v49 = vld [vmem:[%s2066_s0 + $0x1a0] sm:$0xff] }
  0x11   :  { %1323 = vmatprep.subr.mxu0 %v464_v21  ;;  %1431 = vmatprep.subr.mxu1 %v464_v21  ;;  %v30_v48 = vld [vmem:[%s2066_s0 + $0x98] sm:$0xff]  ;;  %v31_v50 = vld [vmem:[%s2066_s0 + $0xa0] sm:$0xff]  ;;  %v64_v51 = vld [vmem:[%s2066_s0 + $0x1a8] sm:$0xff] }
  0x12   :  { %186 = vperm.xlu1 %1446, %v47_v9   ;;  %90 = vperm.xlu0 %1445, %v15_v10   ;;  %v32_v52 = vld [vmem:[%s2066_s0 + $0xa8] sm:$0xff]  ;;  %v65_v53 = vld [vmem:[%s2066_s0 + $0x1b0] sm:$0xff]  ;;  %v66_v55 = vld [vmem:[%s2066_s0 + $0x1b8] sm:$0xff] }
  0x13   :  { %1324 = vmatpush3.msra.mxu0 %v464_v21  ;;  %1439 = vmatpush3.msra.mxu1 %v464_v21  ;;  %v33_v54 = vld [vmem:[%s2066_s0 + $0xb0] sm:$0xff]  ;;  %v34_v56 = vld [vmem:[%s2066_s0 + $0xb8] sm:$0xff]  ;;  %v67_v57 = vld [vmem:[%s2066_s0 + $0x1c0] sm:$0xff] }
  0x14   :  { %1325 = vmatprep.subr.mxu0 %v463_v22  ;;  %1432 = vmatprep.subr.mxu1 %v463_v22  ;;  %v35_v58 = vld [vmem:[%s2066_s0 + $0xc0] sm:$0xff]  ;;  %v68_v59 = vld [vmem:[%s2066_s0 + $0x1c8] sm:$0xff]  ;;  %v69_v61 = vld [vmem:[%s2066_s0 + $0x1d0] sm:$0xff] }
  0x15   :  { %1326 = vmatpush3.msra.mxu0 %v463_v22  ;;  %1440 = vmatpush3.msra.mxu1 %v463_v22  ;;  %v36_v60 = vld [vmem:[%s2066_s0 + $0xc8] sm:$0xff]  ;;  %v37_v62 = vld [vmem:[%s2066_s0 + $0xd0] sm:$0xff]  ;;  %v70_v63 = vld [vmem:[%s2066_s0 + $0x1d8] sm:$0xff] }
  0x16   :  { %189 = vperm.xlu1 %1446, %v48_v11   ;;  %93 = vperm.xlu0 %1445, %v16_v12   ;;  %v38_v0 = vld [vmem:[%s2066_s0 + $0xd8] sm:$0xff]  ;;  %v71_v1 = vld [vmem:[%s2066_s0 + $0x1e0] sm:$0xff]  ;;  %v72_v3 = vld [vmem:[%s2066_s0 + $0x1e8] sm:$0xff] }
  0x17   :  { %1327 = vmatprep.subr.mxu0 %v462_v25  ;;  %1433 = vmatprep.subr.mxu1 %v462_v25  ;;  %v39_v2 = vld [vmem:[%s2066_s0 + $0xe0] sm:$0xff]  ;;  %v40_v4 = vld [vmem:[%s2066_s0 + $0xe8] sm:$0xff]  ;;  %v73_v6 = vld [vmem:[%s2066_s0 + $0x1f0] sm:$0xff] }
  0x18   :  { %1328 = vmatpush3.msra.mxu0 %v462_v25  ;;  %1441 = vmatpush3.msra.mxu1 %v462_v25  ;;  %v41_v7 = vld [vmem:[%s2066_s0 + $0xf0] sm:$0xff]  ;;  %v74_v9 = vld [vmem:[%s2066_s0 + $0x1f8] sm:$0xff] }
  0x19   :  { %1329 = vmatprep.subr.mxu0 %v461_v28  ;;  %1434 = vmatprep.subr.mxu1 %v461_v28  ;;  %v42_v10 = vld [vmem:[%s2066_s0 + $0xf8] sm:$0xff] }
  0x1a   :  { %192 = vperm.xlu1 %1446, %v49_v16   ;;  %96 = vperm.xlu0 %1445, %v17_v17  }
  0x1b   :  { %1330 = vmatpush3.msra.mxu0 %v461_v28  ;;  %1442 = vmatpush3.msra.mxu1 %v461_v28 }
  0x1e   :  { %195 = vperm.xlu1 %1446, %v50_v19   ;;  %99 = vperm.xlu0 %1445, %v18_v20  }
  0x22   :  { %198 = vperm.xlu1 %1446, %v51_v23   ;;  %102 = vperm.xlu0 %1445, %v19_v24  }
  0x26   :  { %201 = vperm.xlu1 %1446, %v52_v26   ;;  %105 = vperm.xlu0 %1445, %v20_v27  }
  0x2a   :  { %204 = vperm.xlu1 %1446, %v53_v29   ;;  %108 = vperm.xlu0 %1445, %v21_v30  }
  0x2e   :  { %207 = vperm.xlu1 %1446, %v54_v31   ;;  %111 = vperm.xlu0 %1445, %v22_v32  }
  0x32   :  { %210 = vperm.xlu1 %1446, %v55_v33   ;;  %114 = vperm.xlu0 %1445, %v23_v34  }
  0x36   :  { %213 = vperm.xlu1 %1446, %v56_v35   ;;  %117 = vperm.xlu0 %1445, %v24_v36  }
  0x3a   :  { %216 = vperm.xlu1 %1446, %v57_v37   ;;  %120 = vperm.xlu0 %1445, %v25_v38  }
  0x3e   :  { %219 = vperm.xlu1 %1446, %v58_v39   ;;  %123 = vperm.xlu0 %1445, %v26_v40  }
  0x42   :  { %222 = vperm.xlu1 %1446, %v59_v41   ;;  %126 = vperm.xlu0 %1445, %v27_v42  }
  0x46   :  { %225 = vperm.xlu1 %1446, %v60_v43   ;;  %129 = vperm.xlu0 %1445, %v28_v44  }
  0x4a   :  { %228 = vperm.xlu1 %1446, %v61_v45   ;;  %132 = vperm.xlu0 %1445, %v29_v46  }
  0x4e   :  { %231 = vperm.xlu1 %1446, %v62_v47   ;;  %135 = vperm.xlu0 %1445, %v30_v48  }
  0x52   :  { %234 = vperm.xlu1 %1446, %v63_v49   ;;  %138 = vperm.xlu0 %1445, %v31_v50  }
  0x56   :  { %237 = vperm.xlu1 %1446, %v64_v51   ;;  %141 = vperm.xlu0 %1445, %v32_v52  }
  0x5a   :  { %240 = vperm.xlu1 %1446, %v65_v53   ;;  %144 = vperm.xlu0 %1445, %v33_v54  }
  0x5e   :  { %243 = vperm.xlu1 %1446, %v66_v55   ;;  %147 = vperm.xlu0 %1445, %v34_v56  }
  0x62   :  { %246 = vperm.xlu1 %1446, %v67_v57   ;;  %150 = vperm.xlu0 %1445, %v35_v58  }
  0x66   :  { %249 = vperm.xlu1 %1446, %v68_v59   ;;  %153 = vperm.xlu0 %1445, %v36_v60  }
  0x6a   :  { %252 = vperm.xlu1 %1446, %v69_v61   ;;  %156 = vperm.xlu0 %1445, %v37_v62  }
  0x6e   :  { %255 = vperm.xlu1 %1446, %v70_v63   ;;  %159 = vperm.xlu0 %1445, %v38_v0  }
  0x72   :  { %258 = vperm.xlu1 %1446, %v71_v1   ;;  %162 = vperm.xlu0 %1445, %v39_v2  }
  0x76   :  { %261 = vperm.xlu1 %1446, %v72_v3   ;;  %165 = vperm.xlu0 %1445, %v40_v4  }
  0x7a   :  { %264 = vperm.xlu1 %1446, %v73_v6   ;;  %168 = vperm.xlu0 %1445, %v41_v7  }
  0x7d   :  { %v82_v11 = vpop.permute.xlu1 %81  ;;  %v79_v12 = vpop.permute.xlu0 %78 }
  0x7e   :  { %vm270_vm1 = vcmp.eq.s32.totalorder %v82_v11, %v1674_v8  ;;  %vm269_vm2 = vcmp.eq.s32.totalorder %v79_v12, %v1674_v8  ;;  %267 = vperm.xlu1 %1446, %v74_v9   ;;  %171 = vperm.xlu0 %1445, %v42_v10  }
  0x7f   :  { %v1116_v14 = vsel %vm270_vm1, 1.0, %v1448_v13  ;;  %v1115_v15 = vsel %vm269_vm2, 1.0, %v1448_v13 }
  0x80   :  { %1331 = vmatprep.mubr.msk.f32.mxu0 %vm469_vm0, %v1115_v15 }
  0x81   :  { %v178_v16 = vpop.permute.xlu1 %177  ;;  %1332 = vmatmul.mubr.msk.f32.vlgmr.msra.gmra.mxu0 %vm469_vm0, %v1116_v14  ;;  %v175_v17 = vpop.permute.xlu0 %174 }
  0x82   :  { %vm302_vm3 = vcmp.eq.s32.totalorder %v178_v16, %v1674_v8  ;;  %vm301_vm4 = vcmp.eq.s32.totalorder %v175_v17, %v1674_v8 }
  0x83   :  { %v1148_v18 = vsel %vm302_vm3, 1.0, %v1448_v13  ;;  %v1147_v19 = vsel %vm301_vm4, 1.0, %v1448_v13 }
  0x84   :  { %1379 = vmatprep.mubr.msk.f32.mxu1 %vm469_vm0, %v1147_v19 }
  0x85   :  { %v181_v20 = vpop.permute.xlu1 %180  ;;  %1380 = vmatmul.mubr.msk.f32.vlgmr.msra.gmra.mxu1 %vm469_vm0, %v1148_v18  ;;  %v85_v21 = vpop.permute.xlu0 %84 }
  0x86   :  { %vm303_vm5 = vcmp.eq.s32.totalorder %v181_v20, %v1674_v8  ;;  %vm271_vm6 = vcmp.eq.s32.totalorder %v85_v21, %v1674_v8 }
  0x87   :  { %v1149_v22 = vsel %vm303_vm5, 1.0, %v1448_v13  ;;  %v1117_v23 = vsel %vm271_vm6, 1.0, %v1448_v13 }
  0x88   :  { %1334 = vmatprep.mubr.msk.f32.mxu0 %vm469_vm0, %v1117_v23  ;;  %1382 = vmatprep.mubr.msk.f32.mxu1 %vm469_vm0, %v1149_v22 }
  0x89   :  { %v184_v24 = vpop.permute.xlu1 %183  ;;  %v88_v25 = vpop.permute.xlu0 %87 }
  0x8a   :  { %vm304_vm7 = vcmp.eq.s32.totalorder %v184_v24, %v1674_v8  ;;  %vm272_vm8 = vcmp.eq.s32.totalorder %v88_v25, %v1674_v8 }
  0x8b   :  { %v1150_v26 = vsel %vm304_vm7, 1.0, %v1448_v13  ;;  %v1118_v27 = vsel %vm272_vm8, 1.0, %v1448_v13 }
  0x8c   :  { %1335 = vmatmul.mubr.msk.f32.gmra.mxu0 %vm469_vm0, %v1118_v27  ;;  %1383 = vmatmul.mubr.msk.f32.gmra.mxu1 %vm469_vm0, %v1150_v26 }
  0x8d   :  { %v187_v28 = vpop.permute.xlu1 %186  ;;  %v91_v29 = vpop.permute.xlu0 %90 }
  0x8e   :  { %vm305_vm9 = vcmp.eq.s32.totalorder %v187_v28, %v1674_v8  ;;  %vm273_vm10 = vcmp.eq.s32.totalorder %v91_v29, %v1674_v8 }
  0x8f   :  { %v1151_v30 = vsel %vm305_vm9, 1.0, %v1448_v13  ;;  %v1119_v31 = vsel %vm273_vm10, 1.0, %v1448_v13 }
  0x90   :  { %1337 = vmatprep.mubr.msk.f32.mxu0 %vm469_vm0, %v1119_v31  ;;  %1385 = vmatprep.mubr.msk.f32.mxu1 %vm469_vm0, %v1151_v30 }
  0x91   :  { %v190_v32 = vpop.permute.xlu1 %189  ;;  %v94_v33 = vpop.permute.xlu0 %93 }
  0x92   :  { %vm306_vm11 = vcmp.eq.s32.totalorder %v190_v32, %v1674_v8  ;;  %vm274_vm12 = vcmp.eq.s32.totalorder %v94_v33, %v1674_v8 }
  0x93   :  { %v1152_v34 = vsel %vm306_vm11, 1.0, %v1448_v13  ;;  %v1120_v35 = vsel %vm274_vm12, 1.0, %v1448_v13 }
  0x94   :  { %1338 = vmatmul.mubr.msk.f32.gmra.mxu0 %vm469_vm0, %v1120_v35  ;;  %1386 = vmatmul.mubr.msk.f32.gmra.mxu1 %vm469_vm0, %v1152_v34 }
  0x95   :  { %v193_v36 = vpop.permute.xlu1 %192  ;;  %v97_v37 = vpop.permute.xlu0 %96 }
  0x96   :  { %vm307_vm13 = vcmp.eq.s32.totalorder %v193_v36, %v1674_v8  ;;  %vm275_vm14 = vcmp.eq.s32.totalorder %v97_v37, %v1674_v8 }
  0x97   :  { %v1153_v38 = vsel %vm307_vm13, 1.0, %v1448_v13  ;;  %v1121_v39 = vsel %vm275_vm14, 1.0, %v1448_v13 }
  0x98   :  { %1340 = vmatprep.mubr.msk.f32.mxu0 %vm469_vm0, %v1121_v39  ;;  %1388 = vmatprep.mubr.msk.f32.mxu1 %vm469_vm0, %v1153_v38 }
  0x99   :  { %v196_v40 = vpop.permute.xlu1 %195  ;;  %v100_v41 = vpop.permute.xlu0 %99 }
  0x9a   :  { %vm308_vm15 = vcmp.eq.s32.totalorder %v196_v40, %v1674_v8  ;;  %vm276_vm1 = vcmp.eq.s32.totalorder %v100_v41, %v1674_v8 }
  0x9b   :  { %v1154_v42 = vsel %vm308_vm15, 1.0, %v1448_v13  ;;  %v1122_v43 = vsel %vm276_vm1, 1.0, %v1448_v13 }
  0x9c   :  { %1341 = vmatmul.mubr.msk.f32.gmra.mxu0 %vm469_vm0, %v1122_v43  ;;  %1389 = vmatmul.mubr.msk.f32.gmra.mxu1 %vm469_vm0, %v1154_v42 }
  0x9d   :  { %v199_v44 = vpop.permute.xlu1 %198  ;;  %v103_v45 = vpop.permute.xlu0 %102 }
  0x9e   :  { %vm309_vm2 = vcmp.eq.s32.totalorder %v199_v44, %v1674_v8  ;;  %vm277_vm3 = vcmp.eq.s32.totalorder %v103_v45, %v1674_v8 }
  0x9f   :  { %v1155_v46 = vsel %vm309_vm2, 1.0, %v1448_v13  ;;  %v1123_v47 = vsel %vm277_vm3, 1.0, %v1448_v13 }
  0xa0   :  { %1343 = vmatprep.mubr.msk.f32.mxu0 %vm469_vm0, %v1123_v47  ;;  %1391 = vmatprep.mubr.msk.f32.mxu1 %vm469_vm0, %v1155_v46 }
  0xa1   :  { %v202_v48 = vpop.permute.xlu1 %201  ;;  %v106_v49 = vpop.permute.xlu0 %105 }
  0xa2   :  { %vm310_vm4 = vcmp.eq.s32.totalorder %v202_v48, %v1674_v8  ;;  %vm278_vm5 = vcmp.eq.s32.totalorder %v106_v49, %v1674_v8 }
  0xa3   :  { %v1156_v50 = vsel %vm310_vm4, 1.0, %v1448_v13  ;;  %v1124_v51 = vsel %vm278_vm5, 1.0, %v1448_v13 }
  0xa4   :  { %1344 = vmatmul.mubr.msk.f32.gmra.mxu0 %vm469_vm0, %v1124_v51  ;;  %1392 = vmatmul.mubr.msk.f32.gmra.mxu1 %vm469_vm0, %v1156_v50 }
  0xa5   :  { %v205_v52 = vpop.permute.xlu1 %204  ;;  %v109_v53 = vpop.permute.xlu0 %108 }
  0xa6   :  { %vm311_vm6 = vcmp.eq.s32.totalorder %v205_v52, %v1674_v8  ;;  %vm279_vm7 = vcmp.eq.s32.totalorder %v109_v53, %v1674_v8 }
  0xa7   :  { %v1157_v54 = vsel %vm311_vm6, 1.0, %v1448_v13  ;;  %v1125_v55 = vsel %vm279_vm7, 1.0, %v1448_v13 }
  0xa8   :  { %1346 = vmatprep.mubr.msk.f32.mxu0 %vm469_vm0, %v1125_v55  ;;  %1394 = vmatprep.mubr.msk.f32.mxu1 %vm469_vm0, %v1157_v54 }
  0xa9   :  { %v208_v56 = vpop.permute.xlu1 %207  ;;  %v112_v57 = vpop.permute.xlu0 %111 }
  0xaa   :  { %vm312_vm8 = vcmp.eq.s32.totalorder %v208_v56, %v1674_v8  ;;  %vm280_vm9 = vcmp.eq.s32.totalorder %v112_v57, %v1674_v8 }
  0xab   :  { %v1158_v58 = vsel %vm312_vm8, 1.0, %v1448_v13  ;;  %v1126_v59 = vsel %vm280_vm9, 1.0, %v1448_v13 }
  0xac   :  { %1347 = vmatmul.mubr.msk.f32.gmra.mxu0 %vm469_vm0, %v1126_v59  ;;  %1395 = vmatmul.mubr.msk.f32.gmra.mxu1 %vm469_vm0, %v1158_v58 }
  0xad   :  { %v211_v60 = vpop.permute.xlu1 %210  ;;  %v115_v61 = vpop.permute.xlu0 %114 }
  0xae   :  { %vm313_vm10 = vcmp.eq.s32.totalorder %v211_v60, %v1674_v8  ;;  %vm281_vm11 = vcmp.eq.s32.totalorder %v115_v61, %v1674_v8 }
  0xaf   :  { %v1159_v62 = vsel %vm313_vm10, 1.0, %v1448_v13  ;;  %v1127_v63 = vsel %vm281_vm11, 1.0, %v1448_v13 }
  0xb0   :  { %1349 = vmatprep.mubr.msk.f32.mxu0 %vm469_vm0, %v1127_v63  ;;  %1397 = vmatprep.mubr.msk.f32.mxu1 %vm469_vm0, %v1159_v62 }
  0xb1   :  { %v214_v0 = vpop.permute.xlu1 %213  ;;  %v118_v1 = vpop.permute.xlu0 %117 }
  0xb2   :  { %vm314_vm12 = vcmp.eq.s32.totalorder %v214_v0, %v1674_v8  ;;  %vm282_vm13 = vcmp.eq.s32.totalorder %v118_v1, %v1674_v8 }
  0xb3   :  { %v1160_v2 = vsel %vm314_vm12, 1.0, %v1448_v13  ;;  %v1128_v3 = vsel %vm282_vm13, 1.0, %v1448_v13 }
  0xb4   :  { %1350 = vmatmul.mubr.msk.f32.gmra.mxu0 %vm469_vm0, %v1128_v3  ;;  %1398 = vmatmul.mubr.msk.f32.gmra.mxu1 %vm469_vm0, %v1160_v2 }
  0xb5   :  { %v217_v4 = vpop.permute.xlu1 %216  ;;  %v121_v5 = vpop.permute.xlu0 %120 }
  0xb6   :  { %vm315_vm14 = vcmp.eq.s32.totalorder %v217_v4, %v1674_v8  ;;  %vm283_vm15 = vcmp.eq.s32.totalorder %v121_v5, %v1674_v8 }
  0xb7   :  { %v1161_v6 = vsel %vm315_vm14, 1.0, %v1448_v13  ;;  %v1129_v7 = vsel %vm283_vm15, 1.0, %v1448_v13 }
  0xb8   :  { %1352 = vmatprep.mubr.msk.f32.mxu0 %vm469_vm0, %v1129_v7  ;;  %1400 = vmatprep.mubr.msk.f32.mxu1 %vm469_vm0, %v1161_v6 }
  0xb9   :  { %v220_v9 = vpop.permute.xlu1 %219  ;;  %v124_v10 = vpop.permute.xlu0 %123 }
  0xba   :  { %vm316_vm1 = vcmp.eq.s32.totalorder %v220_v9, %v1674_v8  ;;  %vm284_vm2 = vcmp.eq.s32.totalorder %v124_v10, %v1674_v8 }
  0xbb   :  { %v1162_v11 = vsel %vm316_vm1, 1.0, %v1448_v13  ;;  %v1130_v12 = vsel %vm284_vm2, 1.0, %v1448_v13 }
  0xbc   :  { %1353 = vmatmul.mubr.msk.f32.gmra.mxu0 %vm469_vm0, %v1130_v12  ;;  %1401 = vmatmul.mubr.msk.f32.gmra.mxu1 %vm469_vm0, %v1162_v11 }
  0xbd   :  { %v223_v14 = vpop.permute.xlu1 %222  ;;  %v127_v15 = vpop.permute.xlu0 %126 }
  0xbe   :  { %vm317_vm3 = vcmp.eq.s32.totalorder %v223_v14, %v1674_v8  ;;  %vm285_vm4 = vcmp.eq.s32.totalorder %v127_v15, %v1674_v8 }
  0xbf   :  { %v1163_v16 = vsel %vm317_vm3, 1.0, %v1448_v13  ;;  %v1131_v17 = vsel %vm285_vm4, 1.0, %v1448_v13 }
  0xc0   :  { %1355 = vmatprep.mubr.msk.f32.mxu0 %vm469_vm0, %v1131_v17  ;;  %1403 = vmatprep.mubr.msk.f32.mxu1 %vm469_vm0, %v1163_v16 }
  0xc1   :  { %v226_v18 = vpop.permute.xlu1 %225  ;;  %v130_v19 = vpop.permute.xlu0 %129 }
  0xc2   :  { %vm318_vm5 = vcmp.eq.s32.totalorder %v226_v18, %v1674_v8  ;;  %vm286_vm6 = vcmp.eq.s32.totalorder %v130_v19, %v1674_v8 }
  0xc3   :  { %v1164_v20 = vsel %vm318_vm5, 1.0, %v1448_v13  ;;  %v1132_v21 = vsel %vm286_vm6, 1.0, %v1448_v13 }
  0xc4   :  { %1356 = vmatmul.mubr.msk.f32.gmra.mxu0 %vm469_vm0, %v1132_v21  ;;  %1404 = vmatmul.mubr.msk.f32.gmra.mxu1 %vm469_vm0, %v1164_v20 }
  0xc5   :  { %v229_v22 = vpop.permute.xlu1 %228  ;;  %v133_v23 = vpop.permute.xlu0 %132 }
  0xc6   :  { %vm319_vm7 = vcmp.eq.s32.totalorder %v229_v22, %v1674_v8  ;;  %vm287_vm8 = vcmp.eq.s32.totalorder %v133_v23, %v1674_v8 }
  0xc7   :  { %v1165_v24 = vsel %vm319_vm7, 1.0, %v1448_v13  ;;  %v1133_v25 = vsel %vm287_vm8, 1.0, %v1448_v13 }
  0xc8   :  { %1358 = vmatprep.mubr.msk.f32.mxu0 %vm469_vm0, %v1133_v25  ;;  %1406 = vmatprep.mubr.msk.f32.mxu1 %vm469_vm0, %v1165_v24 }
  0xc9   :  { %v232_v26 = vpop.permute.xlu1 %231  ;;  %v136_v27 = vpop.permute.xlu0 %135 }
  0xca   :  { %vm320_vm9 = vcmp.eq.s32.totalorder %v232_v26, %v1674_v8  ;;  %vm288_vm10 = vcmp.eq.s32.totalorder %v136_v27, %v1674_v8 }
  0xcb   :  { %v1166_v28 = vsel %vm320_vm9, 1.0, %v1448_v13  ;;  %v1134_v29 = vsel %vm288_vm10, 1.0, %v1448_v13 }
  0xcc   :  { %1359 = vmatmul.mubr.msk.f32.gmra.mxu0 %vm469_vm0, %v1134_v29  ;;  %1407 = vmatmul.mubr.msk.f32.gmra.mxu1 %vm469_vm0, %v1166_v28 }
  0xcd   :  { %v235_v30 = vpop.permute.xlu1 %234  ;;  %v139_v31 = vpop.permute.xlu0 %138 }
  0xce   :  { %vm321_vm11 = vcmp.eq.s32.totalorder %v235_v30, %v1674_v8  ;;  %vm289_vm12 = vcmp.eq.s32.totalorder %v139_v31, %v1674_v8 }
  0xcf   :  { %v1167_v32 = vsel %vm321_vm11, 1.0, %v1448_v13  ;;  %v1135_v33 = vsel %vm289_vm12, 1.0, %v1448_v13 }
  0xd0   :  { %1361 = vmatprep.mubr.msk.f32.mxu0 %vm469_vm0, %v1135_v33  ;;  %1409 = vmatprep.mubr.msk.f32.mxu1 %vm469_vm0, %v1167_v32 }
  0xd1   :  { %v238_v34 = vpop.permute.xlu1 %237  ;;  %v142_v35 = vpop.permute.xlu0 %141 }
  0xd2   :  { %vm322_vm13 = vcmp.eq.s32.totalorder %v238_v34, %v1674_v8  ;;  %vm290_vm14 = vcmp.eq.s32.totalorder %v142_v35, %v1674_v8 }
  0xd3   :  { %v1168_v36 = vsel %vm322_vm13, 1.0, %v1448_v13  ;;  %v1136_v37 = vsel %vm290_vm14, 1.0, %v1448_v13 }
  0xd4   :  { %1362 = vmatmul.mubr.msk.f32.gmra.mxu0 %vm469_vm0, %v1136_v37  ;;  %1410 = vmatmul.mubr.msk.f32.gmra.mxu1 %vm469_vm0, %v1168_v36 }
  0xd5   :  { %v241_v38 = vpop.permute.xlu1 %240  ;;  %v145_v39 = vpop.permute.xlu0 %144 }
  0xd6   :  { %vm323_vm15 = vcmp.eq.s32.totalorder %v241_v38, %v1674_v8  ;;  %vm291_vm1 = vcmp.eq.s32.totalorder %v145_v39, %v1674_v8 }
  0xd7   :  { %v1169_v40 = vsel %vm323_vm15, 1.0, %v1448_v13  ;;  %v1137_v41 = vsel %vm291_vm1, 1.0, %v1448_v13 }
  0xd8   :  { %1364 = vmatprep.mubr.msk.f32.mxu0 %vm469_vm0, %v1137_v41  ;;  %1412 = vmatprep.mubr.msk.f32.mxu1 %vm469_vm0, %v1169_v40 }
  0xd9   :  { %v244_v42 = vpop.permute.xlu1 %243  ;;  %v148_v43 = vpop.permute.xlu0 %147 }
  0xda   :  { %vm324_vm2 = vcmp.eq.s32.totalorder %v244_v42, %v1674_v8  ;;  %vm292_vm3 = vcmp.eq.s32.totalorder %v148_v43, %v1674_v8 }
  0xdb   :  { %v1170_v44 = vsel %vm324_vm2, 1.0, %v1448_v13  ;;  %v1138_v45 = vsel %vm292_vm3, 1.0, %v1448_v13 }
  0xdc   :  { %1365 = vmatmul.mubr.msk.f32.gmra.mxu0 %vm469_vm0, %v1138_v45  ;;  %1413 = vmatmul.mubr.msk.f32.gmra.mxu1 %vm469_vm0, %v1170_v44 }
  0xdd   :  { %v247_v46 = vpop.permute.xlu1 %246  ;;  %v151_v47 = vpop.permute.xlu0 %150 }
  0xde   :  { %vm325_vm4 = vcmp.eq.s32.totalorder %v247_v46, %v1674_v8  ;;  %vm293_vm5 = vcmp.eq.s32.totalorder %v151_v47, %v1674_v8 }
  0xdf   :  { %v1171_v48 = vsel %vm325_vm4, 1.0, %v1448_v13  ;;  %v1139_v49 = vsel %vm293_vm5, 1.0, %v1448_v13 }
  0xe0   :  { %1367 = vmatprep.mubr.msk.f32.mxu0 %vm469_vm0, %v1139_v49  ;;  %1415 = vmatprep.mubr.msk.f32.mxu1 %vm469_vm0, %v1171_v48 }
  0xe1   :  { %v250_v50 = vpop.permute.xlu1 %249  ;;  %v154_v51 = vpop.permute.xlu0 %153 }
  0xe2   :  { %vm326_vm6 = vcmp.eq.s32.totalorder %v250_v50, %v1674_v8  ;;  %vm294_vm7 = vcmp.eq.s32.totalorder %v154_v51, %v1674_v8 }
  0xe3   :  { %v1172_v52 = vsel %vm326_vm6, 1.0, %v1448_v13  ;;  %v1140_v53 = vsel %vm294_vm7, 1.0, %v1448_v13 }
  0xe4   :  { %1368 = vmatmul.mubr.msk.f32.gmra.mxu0 %vm469_vm0, %v1140_v53  ;;  %1416 = vmatmul.mubr.msk.f32.gmra.mxu1 %vm469_vm0, %v1172_v52 }
  0xe5   :  { %v253_v54 = vpop.permute.xlu1 %252  ;;  %v157_v55 = vpop.permute.xlu0 %156 }
  0xe6   :  { %vm327_vm8 = vcmp.eq.s32.totalorder %v253_v54, %v1674_v8  ;;  %vm295_vm9 = vcmp.eq.s32.totalorder %v157_v55, %v1674_v8 }
  0xe7   :  { %v1173_v56 = vsel %vm327_vm8, 1.0, %v1448_v13  ;;  %v1141_v57 = vsel %vm295_vm9, 1.0, %v1448_v13 }
  0xe8   :  { %1370 = vmatprep.mubr.msk.f32.mxu0 %vm469_vm0, %v1141_v57  ;;  %1418 = vmatprep.mubr.msk.f32.mxu1 %vm469_vm0, %v1173_v56 }
  0xe9   :  { %v256_v58 = vpop.permute.xlu1 %255  ;;  %v160_v59 = vpop.permute.xlu0 %159 }
  0xea   :  { %vm328_vm10 = vcmp.eq.s32.totalorder %v256_v58, %v1674_v8  ;;  %vm296_vm11 = vcmp.eq.s32.totalorder %v160_v59, %v1674_v8 }
  0xeb   :  { %v1174_v60 = vsel %vm328_vm10, 1.0, %v1448_v13  ;;  %v1142_v61 = vsel %vm296_vm11, 1.0, %v1448_v13 }
  0xec   :  { %1371 = vmatmul.mubr.msk.f32.gmra.mxu0 %vm469_vm0, %v1142_v61  ;;  %1419 = vmatmul.mubr.msk.f32.gmra.mxu1 %vm469_vm0, %v1174_v60 }
  0xed   :  { %v259_v62 = vpop.permute.xlu1 %258  ;;  %v163_v63 = vpop.permute.xlu0 %162 }
  0xee   :  { %vm329_vm12 = vcmp.eq.s32.totalorder %v259_v62, %v1674_v8  ;;  %vm297_vm13 = vcmp.eq.s32.totalorder %v163_v63, %v1674_v8 }
  0xef   :  { %v1175_v0 = vsel %vm329_vm12, 1.0, %v1448_v13  ;;  %v1143_v1 = vsel %vm297_vm13, 1.0, %v1448_v13 }
  0xf0   :  { %1373 = vmatprep.mubr.msk.f32.mxu0 %vm469_vm0, %v1143_v1  ;;  %1421 = vmatprep.mubr.msk.f32.mxu1 %vm469_vm0, %v1175_v0 }
  0xf1   :  { %v262_v2 = vpop.permute.xlu1 %261  ;;  %v166_v3 = vpop.permute.xlu0 %165 }
  0xf2   :  { %vm330_vm14 = vcmp.eq.s32.totalorder %v262_v2, %v1674_v8  ;;  %vm298_vm15 = vcmp.eq.s32.totalorder %v166_v3, %v1674_v8 }
  0xf3   :  { %v1176_v4 = vsel %vm330_vm14, 1.0, %v1448_v13  ;;  %v1144_v5 = vsel %vm298_vm15, 1.0, %v1448_v13 }
  0xf4   :  { %1374 = vmatmul.mubr.msk.f32.gmra.mxu0 %vm469_vm0, %v1144_v5  ;;  %1422 = vmatmul.mubr.msk.f32.gmra.mxu1 %vm469_vm0, %v1176_v4 }
  0xf5   :  { %v265_v6 = vpop.permute.xlu1 %264  ;;  %v169_v7 = vpop.permute.xlu0 %168 }
  0xf6   :  { %vm331_vm1 = vcmp.eq.s32.totalorder %v265_v6, %v1674_v8  ;;  %vm299_vm2 = vcmp.eq.s32.totalorder %v169_v7, %v1674_v8 }
  0xf7   :  { %v1177_v9 = vsel %vm331_vm1, 1.0, %v1448_v13  ;;  %v1145_v10 = vsel %vm299_vm2, 1.0, %v1448_v13 }
  0xf8   :  { %1376 = vmatprep.mubr.msk.f32.mxu0 %vm469_vm0, %v1145_v10  ;;  %1424 = vmatprep.mubr.msk.f32.mxu1 %vm469_vm0, %v1177_v9 }
  0xf9   :  { %v268_v11 = vpop.permute.xlu1 %267  ;;  %v172_v12 = vpop.permute.xlu0 %171 }
  0xfa   :  { %vm332_vm3 = vcmp.eq.s32.totalorder %v268_v11, %v1674_v8  ;;  %vm300_vm4 = vcmp.eq.s32.totalorder %v172_v12, %v1674_v8 }
  0xfb   :  { %v1178_v14 = vsel %vm332_vm3, 1.0, %v1448_v13  ;;  %v1146_v15 = vsel %vm300_vm4, 1.0, %v1448_v13 }
  0xfc   :  { %1377 = vmatmul.mubr.msk.f32.gmra.mxu0 %vm469_vm0, %v1146_v15  ;;  %1425 = vmatmul.mubr.msk.f32.gmra.mxu1 %vm469_vm0, %v1178_v14 }
 0x141   :  { %v1333_v16 = vpop.f32.mrf.mxu0 }
 0x142   :  { %1048 = vst [vmem:[%s2068_s2 + $0x8] sm:$0xff] %v1333_v16 }
 0x143   :  { %v728_v17 = vpop.f32.mrf.mxu0 }
 0x144   :  { %1047 = vst [vmem:[%s2068_s2] sm:$0xff] %v728_v17 }
 0x145   :  { %v1381_v18 = vpop.f32.mrf.mxu1 }
 0x146   :  { %1080 = vst [vmem:[%s2068_s2 + $0x108] sm:$0xff] %v1381_v18 }
 0x147   :  { %v888_v8 = vpop.f32.mrf.mxu1 }
 0x148   :  { %1079 = vst [vmem:[%s2068_s2 + $0x100] sm:$0xff] %v888_v8 }
 0x14c   :  { %v1336_v13 = vpop.f32.mrf.mxu0  ;;  %v1384_v19 = vpop.f32.mrf.mxu1 }
 0x14d   :  { %1050 = vst [vmem:[%s2068_s2 + $0x18] sm:$0xff] %v1336_v13  ;;  %1082 = vst [vmem:[%s2068_s2 + $0x118] sm:$0xff] %v1384_v19 }
 0x14e   :  { %v738_v20 = vpop.f32.mrf.mxu0  ;;  %v898_v21 = vpop.f32.mrf.mxu1 }
 0x14f   :  { %1049 = vst [vmem:[%s2068_s2 + $0x10] sm:$0xff] %v738_v20  ;;  %1081 = vst [vmem:[%s2068_s2 + $0x110] sm:$0xff] %v898_v21 }
 0x154   :  { %v1339_v22 = vpop.f32.mrf.mxu0  ;;  %v1387_v23 = vpop.f32.mrf.mxu1 }
 0x155   :  { %1052 = vst [vmem:[%s2068_s2 + $0x28] sm:$0xff] %v1339_v22  ;;  %1084 = vst [vmem:[%s2068_s2 + $0x128] sm:$0xff] %v1387_v23 }
 0x156   :  { %v748_v24 = vpop.f32.mrf.mxu0  ;;  %v908_v25 = vpop.f32.mrf.mxu1 }
 0x157   :  { %1051 = vst [vmem:[%s2068_s2 + $0x20] sm:$0xff] %v748_v24  ;;  %1083 = vst [vmem:[%s2068_s2 + $0x120] sm:$0xff] %v908_v25 }
 0x15c   :  { %v1342_v26 = vpop.f32.mrf.mxu0  ;;  %v1390_v27 = vpop.f32.mrf.mxu1 }
 0x15d   :  { %1054 = vst [vmem:[%s2068_s2 + $0x38] sm:$0xff] %v1342_v26  ;;  %1086 = vst [vmem:[%s2068_s2 + $0x138] sm:$0xff] %v1390_v27 }
 0x15e   :  { %v758_v28 = vpop.f32.mrf.mxu0  ;;  %v918_v29 = vpop.f32.mrf.mxu1 }
 0x15f   :  { %1053 = vst [vmem:[%s2068_s2 + $0x30] sm:$0xff] %v758_v28  ;;  %1085 = vst [vmem:[%s2068_s2 + $0x130] sm:$0xff] %v918_v29 }
 0x164   :  { %v1345_v30 = vpop.f32.mrf.mxu0  ;;  %v1393_v31 = vpop.f32.mrf.mxu1 }
 0x165   :  { %1056 = vst [vmem:[%s2068_s2 + $0x48] sm:$0xff] %v1345_v30  ;;  %1088 = vst [vmem:[%s2068_s2 + $0x148] sm:$0xff] %v1393_v31 }
 0x166   :  { %v768_v32 = vpop.f32.mrf.mxu0  ;;  %v928_v33 = vpop.f32.mrf.mxu1 }
 0x167   :  { %1055 = vst [vmem:[%s2068_s2 + $0x40] sm:$0xff] %v768_v32  ;;  %1087 = vst [vmem:[%s2068_s2 + $0x140] sm:$0xff] %v928_v33 }
 0x16c   :  { %v1348_v34 = vpop.f32.mrf.mxu0  ;;  %v1396_v35 = vpop.f32.mrf.mxu1 }
 0x16d   :  { %1058 = vst [vmem:[%s2068_s2 + $0x58] sm:$0xff] %v1348_v34  ;;  %1090 = vst [vmem:[%s2068_s2 + $0x158] sm:$0xff] %v1396_v35 }
 0x16e   :  { %v778_v36 = vpop.f32.mrf.mxu0  ;;  %v938_v37 = vpop.f32.mrf.mxu1 }
 0x16f   :  { %1057 = vst [vmem:[%s2068_s2 + $0x50] sm:$0xff] %v778_v36  ;;  %1089 = vst [vmem:[%s2068_s2 + $0x150] sm:$0xff] %v938_v37 }
 0x174   :  { %v1351_v38 = vpop.f32.mrf.mxu0  ;;  %v1399_v39 = vpop.f32.mrf.mxu1 }
 0x175   :  { %1060 = vst [vmem:[%s2068_s2 + $0x68] sm:$0xff] %v1351_v38  ;;  %1092 = vst [vmem:[%s2068_s2 + $0x168] sm:$0xff] %v1399_v39 }
 0x176   :  { %v788_v40 = vpop.f32.mrf.mxu0  ;;  %v948_v41 = vpop.f32.mrf.mxu1 }
 0x177   :  { %1059 = vst [vmem:[%s2068_s2 + $0x60] sm:$0xff] %v788_v40  ;;  %1091 = vst [vmem:[%s2068_s2 + $0x160] sm:$0xff] %v948_v41 }
 0x17c   :  { %v1354_v42 = vpop.f32.mrf.mxu0  ;;  %v1402_v43 = vpop.f32.mrf.mxu1 }
 0x17d   :  { %1062 = vst [vmem:[%s2068_s2 + $0x78] sm:$0xff] %v1354_v42  ;;  %1094 = vst [vmem:[%s2068_s2 + $0x178] sm:$0xff] %v1402_v43 }
 0x17e   :  { %v798_v44 = vpop.f32.mrf.mxu0  ;;  %v958_v45 = vpop.f32.mrf.mxu1 }
 0x17f   :  { %1061 = vst [vmem:[%s2068_s2 + $0x70] sm:$0xff] %v798_v44  ;;  %1093 = vst [vmem:[%s2068_s2 + $0x170] sm:$0xff] %v958_v45 }
 0x184   :  { %v1357_v46 = vpop.f32.mrf.mxu0  ;;  %v1405_v47 = vpop.f32.mrf.mxu1 }
 0x185   :  { %1064 = vst [vmem:[%s2068_s2 + $0x88] sm:$0xff] %v1357_v46  ;;  %1096 = vst [vmem:[%s2068_s2 + $0x188] sm:$0xff] %v1405_v47 }
 0x186   :  { %v808_v48 = vpop.f32.mrf.mxu0  ;;  %v968_v49 = vpop.f32.mrf.mxu1 }
 0x187   :  { %1063 = vst [vmem:[%s2068_s2 + $0x80] sm:$0xff] %v808_v48  ;;  %1095 = vst [vmem:[%s2068_s2 + $0x180] sm:$0xff] %v968_v49 }
 0x18c   :  { %v1360_v50 = vpop.f32.mrf.mxu0  ;;  %v1408_v51 = vpop.f32.mrf.mxu1 }
 0x18d   :  { %1066 = vst [vmem:[%s2068_s2 + $0x98] sm:$0xff] %v1360_v50  ;;  %1098 = vst [vmem:[%s2068_s2 + $0x198] sm:$0xff] %v1408_v51 }
 0x18e   :  { %v818_v52 = vpop.f32.mrf.mxu0  ;;  %v978_v53 = vpop.f32.mrf.mxu1 }
 0x18f   :  { %1065 = vst [vmem:[%s2068_s2 + $0x90] sm:$0xff] %v818_v52  ;;  %1097 = vst [vmem:[%s2068_s2 + $0x190] sm:$0xff] %v978_v53 }
 0x194   :  { %v1363_v54 = vpop.f32.mrf.mxu0  ;;  %v1411_v55 = vpop.f32.mrf.mxu1 }
 0x195   :  { %1068 = vst [vmem:[%s2068_s2 + $0xa8] sm:$0xff] %v1363_v54  ;;  %1100 = vst [vmem:[%s2068_s2 + $0x1a8] sm:$0xff] %v1411_v55 }
 0x196   :  { %v828_v56 = vpop.f32.mrf.mxu0  ;;  %v988_v57 = vpop.f32.mrf.mxu1 }
 0x197   :  { %1067 = vst [vmem:[%s2068_s2 + $0xa0] sm:$0xff] %v828_v56  ;;  %1099 = vst [vmem:[%s2068_s2 + $0x1a0] sm:$0xff] %v988_v57 }
 0x19c   :  { %v1366_v58 = vpop.f32.mrf.mxu0  ;;  %v1414_v59 = vpop.f32.mrf.mxu1 }
 0x19d   :  { %1070 = vst [vmem:[%s2068_s2 + $0xb8] sm:$0xff] %v1366_v58  ;;  %1102 = vst [vmem:[%s2068_s2 + $0x1b8] sm:$0xff] %v1414_v59 }
 0x19e   :  { %v838_v60 = vpop.f32.mrf.mxu0  ;;  %v998_v61 = vpop.f32.mrf.mxu1 }
 0x19f   :  { %1069 = vst [vmem:[%s2068_s2 + $0xb0] sm:$0xff] %v838_v60  ;;  %1101 = vst [vmem:[%s2068_s2 + $0x1b0] sm:$0xff] %v998_v61 }
 0x1a4   :  { %v1369_v62 = vpop.f32.mrf.mxu0  ;;  %v1417_v63 = vpop.f32.mrf.mxu1 }
 0x1a5   :  { %1072 = vst [vmem:[%s2068_s2 + $0xc8] sm:$0xff] %v1369_v62  ;;  %1104 = vst [vmem:[%s2068_s2 + $0x1c8] sm:$0xff] %v1417_v63 }
 0x1a6   :  { %v848_v0 = vpop.f32.mrf.mxu0  ;;  %v1008_v1 = vpop.f32.mrf.mxu1 }
 0x1a7   :  { %1071 = vst [vmem:[%s2068_s2 + $0xc0] sm:$0xff] %v848_v0  ;;  %1103 = vst [vmem:[%s2068_s2 + $0x1c0] sm:$0xff] %v1008_v1 }
 0x1ac   :  { %v1372_v2 = vpop.f32.mrf.mxu0  ;;  %v1420_v3 = vpop.f32.mrf.mxu1 }
 0x1ad   :  { %1074 = vst [vmem:[%s2068_s2 + $0xd8] sm:$0xff] %v1372_v2  ;;  %1106 = vst [vmem:[%s2068_s2 + $0x1d8] sm:$0xff] %v1420_v3 }
 0x1ae   :  { %v858_v4 = vpop.f32.mrf.mxu0  ;;  %v1018_v5 = vpop.f32.mrf.mxu1 }
 0x1af   :  { %1073 = vst [vmem:[%s2068_s2 + $0xd0] sm:$0xff] %v858_v4  ;;  %1105 = vst [vmem:[%s2068_s2 + $0x1d0] sm:$0xff] %v1018_v5 }
 0x1b4   :  { %v1375_v6 = vpop.f32.mrf.mxu0  ;;  %v1423_v7 = vpop.f32.mrf.mxu1 }
 0x1b5   :  { %1076 = vst [vmem:[%s2068_s2 + $0xe8] sm:$0xff] %v1375_v6  ;;  %1108 = vst [vmem:[%s2068_s2 + $0x1e8] sm:$0xff] %v1423_v7 }
 0x1b6   :  { %v868_v9 = vpop.f32.mrf.mxu0  ;;  %v1028_v10 = vpop.f32.mrf.mxu1 }
 0x1b7   :  { %1075 = vst [vmem:[%s2068_s2 + $0xe0] sm:$0xff] %v868_v9  ;;  %1107 = vst [vmem:[%s2068_s2 + $0x1e0] sm:$0xff] %v1028_v10 }
 0x1bc   :  { %v1378_v11 = vpop.f32.mrf.mxu0  ;;  %v1426_v12 = vpop.f32.mrf.mxu1 }
 0x1bd   :  { %1078 = vst [vmem:[%s2068_s2 + $0xf8] sm:$0xff] %v1378_v11  ;;  %1110 = vst [vmem:[%s2068_s2 + $0x1f8] sm:$0xff] %v1426_v12 }
 0x1be   :  { %v878_v14 = vpop.f32.mrf.mxu0  ;;  %v1038_v15 = vpop.f32.mrf.mxu1 }
 0x1bf   :  { %1077 = vst [vmem:[%s2068_s2 + $0xf0] sm:$0xff] %v878_v14  ;;  %1109 = vst [vmem:[%s2068_s2 + $0x1f0] sm:$0xff] %v1038_v15 }

</bundles_post_ra>
